<compile_context>
chip_gen: v7x
topology: tpu7x:2x2x1
jax: 0.10.0
libtpu: 0.0.40
codegen_flags: <defaults>
</compile_context>

<pallas_src>
import jax
import jax.numpy as jnp
from jax.experimental import pallas as pl
from jax.experimental.pallas import tpu as pltpu


# ----------------------------------------------------------------------------
# Fused Pallas kernel: all LSTM layers + FC head in one call
# ----------------------------------------------------------------------------
def _make_fused_lstm_kernel(num_layers, T, B, H, Din, Dout):
    """Builds the fused kernel for a fixed (static) configuration.

    Kernel ref layout (inputs, then output):
      x_ref   : (T, B, 1) time-major input   (if Din == 1)
                (T*B, Din) flattened input   (if Din  > 1)
      w0_ref  : (Din, 4H) f32   layer-0 input weight (transposed)
      b0_ref  : (1, 4H)   f32   layer-0 summed bias
      whh0_ref: (H, 4H)   bf16  layer-0 recurrent weight (transposed)
      per layer l in [1, L): wstk_l (2H, 4H) bf16, b_l (1, 4H) f32
      fc_w (H, Dout) bf16, fc_b (1, Dout) f32
      o_ref   : (B, Dout) f32
    """
    G = 4 * H

    def kernel(*refs):
        x_ref = refs[0]
        w0_ref = refs[1]
        b0_ref = refs[2]
        whh0_ref = refs[3]
        idx = 4
        deep_refs = []
        for _ in range(num_layers - 1):
            deep_refs.append((refs[idx], refs[idx + 1]))
            idx += 2
        fcw_ref, fcb_ref, o_ref = refs[idx], refs[idx + 1], refs[idx + 2]

        # ---- load weights once; hoist bias broadcasts out of the loop ----
        whh0 = whh0_ref[...]                                       # (H, 4H) bf16
        wstk = [d[0][...] for d in deep_refs]                      # (2H, 4H) bf16
        bias_deep = [jnp.broadcast_to(d[1][...], (B, G)) for d in deep_refs]

        # ---- hoisted layer-0 input projection (+ bias fold), out of the loop --
        if Din == 1:
            # Rank-1 "outer product": pure VPU broadcast multiply, no MXU.
            w0_row = w0_ref[...].reshape(1, 1, G)
            b0_row = b0_ref[...].reshape(1, 1, G)
            z_in = x_ref[...] * w0_row + b0_row                    # (T, B, 4H) f32
            z_slices = [z_in[t] for t in range(T)]                 # tile-aligned
        else:
            z2 = jnp.dot(x_ref[...], w0_ref[...].astype(jnp.float32),
                         preferred_element_type=jnp.float32)       # (T*B, 4H)
            z2 = z2 + jnp.broadcast_to(b0_ref[...], (T * B, G))
            z_slices = [z2[t * B:(t + 1) * B, :] for t in range(T)]

        def lstm_cell(z, c_prev):
            # Full-vreg activations once (EUP), gate columns selected after.
            sz = jax.nn.sigmoid(z)                                 # (B, 4H)
            tz = jnp.tanh(z)                                       # (B, 4H)
            i = sz[:, 0 * H:1 * H]
            f = sz[:, 1 * H:2 * H]
            g = tz[:, 2 * H:3 * H]
            o = sz[:, 3 * H:4 * H]
            c_new = f * c_prev + i * g
            h_new = o * jnp.tanh(c_new)
            return h_new, c_new

        zeros = jnp.zeros((B, H), jnp.float32)
        h = [zeros] * num_layers
        c = [zeros] * num_layers

        # T is small & static: fully unrolled time loop (static slices only).
        # All layers advance inside the same step; per-step layer outputs never
        # leave vregs/VMEM.
        for t in range(T):
            # layer 0: precomputed input term + single recurrent matmul
            z0 = z_slices[t] + jnp.dot(h[0].astype(jnp.bfloat16), whh0,
                                       preferred_element_type=jnp.float32)
            h[0], c[0] = lstm_cell(z0, c[0])
            # deeper layers: one fused matmul per layer per step
            for l in range(1, num_layers):
                hcat = jnp.concatenate([h[l - 1], h[l]],
                                       axis=1).astype(jnp.bfloat16)  # (B, 2H)
                z_l = (jnp.dot(hcat, wstk[l - 1],
                               preferred_element_type=jnp.float32)
                       + bias_deep[l - 1])
                h[l], c[l] = lstm_cell(z_l, c[l])

        # ---- fused FC head on the final top-layer hidden state ----
        o_ref[...] = (jnp.dot(h[-1].astype(jnp.bfloat16), fcw_ref[...],
                              preferred_element_type=jnp.float32)
                      + fcb_ref[...])

    return kernel


# ----------------------------------------------------------------------------
# Parameter preparation (done ONCE, not per forward call)
# ----------------------------------------------------------------------------
def prepare_params(params):
    """Pre-transpose weights, pre-sum biases, pre-stack deep-layer weights,
    and pre-cast matmul operands to bf16."""
    lstm = params["lstm"]
    wih0, whh0, bih0, bhh0 = lstm[0]
    prep = {
        "w0": wih0.T.astype(jnp.float32),                      # (Din, 4H)
        "b0": (bih0 + bhh0).reshape(1, -1).astype(jnp.float32),  # (1, 4H)
        "whh0": whh0.T.astype(jnp.bfloat16),                   # (H, 4H)
        "deep": [],
        "fc_w": params["fc_w"].T.astype(jnp.bfloat16),         # (H, Dout)
        "fc_b": params["fc_b"].reshape(1, -1).astype(jnp.float32),
    }
    for (wih, whh, bih, bhh) in lstm[1:]:
        wstk = jnp.concatenate([wih.T, whh.T], axis=0).astype(jnp.bfloat16)  # (2H, 4H)
        b = (bih + bhh).reshape(1, -1).astype(jnp.float32)
        prep["deep"].append((wstk, b))
    return prep


# ----------------------------------------------------------------------------
# Forward wrapper: single pallas_call, everything VMEM-resident
# ----------------------------------------------------------------------------
def lstm_regressor_forward(x, prep):
    """x: (B, T, input_size), batch_first — matches PyTorch forward."""
    x = x.astype(jnp.float32)
    B, T, Din = x.shape
    num_layers = 1 + len(prep["deep"])
    H = prep["whh0"].shape[0]
    Dout = prep["fc_w"].shape[1]

    x_tm = jnp.transpose(x, (1, 0, 2))                 # (T, B, Din) time-major
    x_arg = x_tm if Din == 1 else x_tm.reshape(T * B, Din)

    args = [x_arg, prep["w0"], prep["b0"], prep["whh0"]]
    for (wstk, b) in prep["deep"]:
        args += [wstk, b]
    args += [prep["fc_w"], prep["fc_b"]]

    kernel = _make_fused_lstm_kernel(num_layers, T, B, H, Din, Dout)
    return pl.pallas_call(
        kernel,
        out_shape=jax.ShapeDtypeStruct((B, Dout), jnp.float32),
        in_specs=[pl.BlockSpec(memory_space=pltpu.MemorySpace.VMEM)] * len(args),
        out_specs=pl.BlockSpec(memory_space=pltpu.MemorySpace.VMEM),
    )(*args)


# ----------------------------------------------------------------------------
# Pure-JAX f32 reference (same math as PyTorch, no Pallas)
# ----------------------------------------------------------------------------
def lstm_regressor_reference(x, params):
    x_tm = jnp.transpose(x, (1, 0, 2)).astype(jnp.float32)   # (T, B, Din)
    T, B, _ = x_tm.shape
    layer_in = x_tm
    for (wih, whh, bih, bhh) in params["lstm"]:
        H = whh.shape[1]
        h = jnp.zeros((B, H), jnp.float32)
        c = jnp.zeros((B, H), jnp.float32)
        outs = []
        for t in range(T):
            z = layer_in[t] @ wih.T + h @ whh.T + bih + bhh
            i = jax.nn.sigmoid(z[:, :H])
            f = jax.nn.sigmoid(z[:, H:2 * H])
            g = jnp.tanh(z[:, 2 * H:3 * H])
            o = jax.nn.sigmoid(z[:, 3 * H:])
            c = f * c + i * g
            h = o * jnp.tanh(c)
            outs.append(h)
        layer_in = jnp.stack(outs)
    return layer_in[-1] @ params["fc_w"].T + params["fc_b"]


# ----------------------------------------------------------------------------
# Deterministic parameter init (PyTorch-style uniform(-1/sqrt(H), 1/sqrt(H)))
# ----------------------------------------------------------------------------
def init_params(key, input_size, hidden_size, num_layers, output_size):
    k = 1.0 / jnp.sqrt(hidden_size)
    lstm = []
    for layer in range(num_layers):
        din = input_size if layer == 0 else hidden_size
        key, k1, k2, k3, k4 = jax.random.split(key, 5)
        wih = jax.random.uniform(k1, (4 * hidden_size, din), jnp.float32, -k, k)
        whh = jax.random.uniform(k2, (4 * hidden_size, hidden_size), jnp.float32, -k, k)
        bih = jax.random.uniform(k3, (4 * hidden_size,), jnp.float32, -k, k)
        bhh = jax.random.uniform(k4, (4 * hidden_size,), jnp.float32, -k, k)
        lstm.append((wih, whh, bih, bhh))
    key, k1, k2 = jax.random.split(key, 3)
    kf = 1.0 / jnp.sqrt(hidden_size)
    fc_w = jax.random.uniform(k1, (output_size, hidden_size), jnp.float32, -kf, kf)
    fc_b = jax.random.uniform(k2, (output_size,), jnp.float32, -kf, kf)
    return {"lstm": lstm, "fc_w": fc_w, "fc_b": fc_b}


# ----------------------------------------------------------------------------
if __name__ == "__main__":
    # Small shapes consistent with the module: batch=2, seq=8, input_size=1,
    # hidden_size=32, num_layers=2, output_size=1 (unidirectional LSTM).
    B, T, INPUT, HIDDEN, LAYERS, OUT = 2, 8, 1, 32, 2, 1

    key = jax.random.PRNGKey(0)
    key, pkey, xkey = jax.random.split(key, 3)
    params = init_params(pkey, INPUT, HIDDEN, LAYERS, OUT)
    x = jax.random.normal(xkey, (B, T, INPUT), jnp.float32)

    prep = prepare_params(params)
    fwd = jax.jit(lstm_regressor_forward)
    y = jax.block_until_ready(fwd(x, prep))

    y_ref = jax.block_until_ready(lstm_regressor_reference(x, params))
    assert y.shape == (B, OUT), f"bad output shape {y.shape}"
    # bf16 matmul operands (f32 accumulation / state): looser tolerance vs the
    # pure-f32 reference — accepted precision tradeoff from the perf review.
    assert jnp.allclose(y, y_ref, atol=5e-2), (y, y_ref, jnp.abs(y - y_ref).max())

    print("KERNEL_OK")
</pallas_src>

<mosaic_0001>
module attributes {stable_mosaic.version = 11 : i64} {
  func.func @kernel(%arg0: memref<8x2x1xf32, #tpu.memory_space<vmem>>, %arg1: memref<1x128xf32, #tpu.memory_space<vmem>>, %arg2: memref<1x128xf32, #tpu.memory_space<vmem>>, %arg3: memref<32x128xbf16, #tpu.memory_space<vmem>>, %arg4: memref<64x128xbf16, #tpu.memory_space<vmem>>, %arg5: memref<1x128xf32, #tpu.memory_space<vmem>>, %arg6: memref<32x1xbf16, #tpu.memory_space<vmem>>, %arg7: memref<1x1xf32, #tpu.memory_space<vmem>>, %arg8: memref<2x1xf32, #tpu.memory_space<vmem>>) attributes {dimension_semantics = [], scalar_prefetch = 0 : i64, scratch_operands = 0 : i64, tpu.core_type = #tpu.core_type<tc>} {
    %c0 = arith.constant 0 : index
    %c0_0 = arith.constant 0 : index
    %0 = vector.load %arg3[%c0, %c0_0] : memref<32x128xbf16, #tpu.memory_space<vmem>>, vector<32x128xbf16>
    %c0_1 = arith.constant 0 : index
    %c0_2 = arith.constant 0 : index
    %1 = vector.load %arg4[%c0_1, %c0_2] : memref<64x128xbf16, #tpu.memory_space<vmem>>, vector<64x128xbf16>
    %c0_3 = arith.constant 0 : index
    %c0_4 = arith.constant 0 : index
    %2 = vector.load %arg5[%c0_3, %c0_4] : memref<1x128xf32, #tpu.memory_space<vmem>>, vector<1x128xf32>
    %3 = vector.shape_cast %2 : vector<1x128xf32> to vector<1x128xf32>
    %4 = vector.broadcast %3 : vector<1x128xf32> to vector<2x128xf32>
    %c0_5 = arith.constant 0 : index
    %c0_6 = arith.constant 0 : index
    %5 = vector.load %arg1[%c0_5, %c0_6] : memref<1x128xf32, #tpu.memory_space<vmem>>, vector<1x128xf32>
    %6 = vector.shape_cast %5 : vector<1x128xf32> to vector<1x1x128xf32>
    %c0_7 = arith.constant 0 : index
    %c0_8 = arith.constant 0 : index
    %7 = vector.load %arg2[%c0_7, %c0_8] : memref<1x128xf32, #tpu.memory_space<vmem>>, vector<1x128xf32>
    %8 = vector.shape_cast %7 : vector<1x128xf32> to vector<1x1x128xf32>
    %c0_9 = arith.constant 0 : index
    %c0_10 = arith.constant 0 : index
    %c0_11 = arith.constant 0 : index
    %9 = vector.load %arg0[%c0_9, %c0_10, %c0_11] : memref<8x2x1xf32, #tpu.memory_space<vmem>>, vector<8x2x1xf32>
    %10 = vector.broadcast %9 : vector<8x2x1xf32> to vector<8x2x128xf32>
    %11 = vector.broadcast %6 : vector<1x1x128xf32> to vector<8x2x128xf32>
    %12 = arith.mulf %10, %11 : vector<8x2x128xf32>
    %13 = vector.broadcast %8 : vector<1x1x128xf32> to vector<8x2x128xf32>
    %14 = arith.addf %12, %13 : vector<8x2x128xf32>
    %15 = vector.extract_strided_slice %14 {offsets = [0, 0, 0], sizes = [1, 2, 128], strides = [1, 1, 1]} : vector<8x2x128xf32> to vector<1x2x128xf32>
    %16 = vector.shape_cast %15 : vector<1x2x128xf32> to vector<2x128xf32>
    %17 = vector.extract_strided_slice %14 {offsets = [1, 0, 0], sizes = [1, 2, 128], strides = [1, 1, 1]} : vector<8x2x128xf32> to vector<1x2x128xf32>
    %18 = vector.shape_cast %17 : vector<1x2x128xf32> to vector<2x128xf32>
    %19 = vector.extract_strided_slice %14 {offsets = [2, 0, 0], sizes = [1, 2, 128], strides = [1, 1, 1]} : vector<8x2x128xf32> to vector<1x2x128xf32>
    %20 = vector.shape_cast %19 : vector<1x2x128xf32> to vector<2x128xf32>
    %21 = vector.extract_strided_slice %14 {offsets = [3, 0, 0], sizes = [1, 2, 128], strides = [1, 1, 1]} : vector<8x2x128xf32> to vector<1x2x128xf32>
    %22 = vector.shape_cast %21 : vector<1x2x128xf32> to vector<2x128xf32>
    %23 = vector.extract_strided_slice %14 {offsets = [4, 0, 0], sizes = [1, 2, 128], strides = [1, 1, 1]} : vector<8x2x128xf32> to vector<1x2x128xf32>
    %24 = vector.shape_cast %23 : vector<1x2x128xf32> to vector<2x128xf32>
    %25 = vector.extract_strided_slice %14 {offsets = [5, 0, 0], sizes = [1, 2, 128], strides = [1, 1, 1]} : vector<8x2x128xf32> to vector<1x2x128xf32>
    %26 = vector.shape_cast %25 : vector<1x2x128xf32> to vector<2x128xf32>
    %27 = vector.extract_strided_slice %14 {offsets = [6, 0, 0], sizes = [1, 2, 128], strides = [1, 1, 1]} : vector<8x2x128xf32> to vector<1x2x128xf32>
    %28 = vector.shape_cast %27 : vector<1x2x128xf32> to vector<2x128xf32>
    %29 = vector.extract_strided_slice %14 {offsets = [7, 0, 0], sizes = [1, 2, 128], strides = [1, 1, 1]} : vector<8x2x128xf32> to vector<1x2x128xf32>
    %30 = vector.shape_cast %29 : vector<1x2x128xf32> to vector<2x128xf32>
    %cst = arith.constant 0.000000e+00 : f32
    %31 = vector.broadcast %cst : f32 to vector<2x32xf32>
    %32 = arith.truncf %31 : vector<2x32xf32> to vector<2x32xbf16>
    %cst_12 = arith.constant dense<0.000000e+00> : vector<2x128xf32>
    %33 = tpu.matmul %32, %0, %cst_12 {dimension_numbers = #tpu.dot_dimension_numbers<[1], [0], [0], [1], [0, 0, 1, 1], [], []>} : vector<2x32xbf16>, vector<32x128xbf16>, vector<2x128xf32> -> vector<2x128xf32>
    %34 = arith.addf %16, %33 : vector<2x128xf32>
    %35 = arith.negf %34 : vector<2x128xf32>
    %36 = math.exp %35 : vector<2x128xf32>
    %cst_13 = arith.constant 1.000000e+00 : f32
    %37 = vector.broadcast %cst_13 : f32 to vector<2x128xf32>
    %38 = arith.addf %37, %36 : vector<2x128xf32>
    %39 = arith.divf %37, %38 : vector<2x128xf32>
    %40 = math.tanh %34 : vector<2x128xf32>
    %41 = vector.extract_strided_slice %39 {offsets = [0, 0], sizes = [2, 32], strides = [1, 1]} : vector<2x128xf32> to vector<2x32xf32>
    %42 = vector.extract_strided_slice %39 {offsets = [0, 32], sizes = [2, 32], strides = [1, 1]} : vector<2x128xf32> to vector<2x32xf32>
    %43 = vector.extract_strided_slice %40 {offsets = [0, 64], sizes = [2, 32], strides = [1, 1]} : vector<2x128xf32> to vector<2x32xf32>
    %44 = vector.extract_strided_slice %39 {offsets = [0, 96], sizes = [2, 32], strides = [1, 1]} : vector<2x128xf32> to vector<2x32xf32>
    %45 = arith.mulf %42, %31 : vector<2x32xf32>
    %46 = arith.mulf %41, %43 : vector<2x32xf32>
    %47 = arith.addf %45, %46 : vector<2x32xf32>
    %48 = math.tanh %47 : vector<2x32xf32>
    %49 = arith.mulf %44, %48 : vector<2x32xf32>
    %50 = tpu.concatenate %49, %31 in 1 : vector<2x32xf32>, vector<2x32xf32> -> vector<2x64xf32>
    %51 = arith.truncf %50 : vector<2x64xf32> to vector<2x64xbf16>
    %cst_14 = arith.constant dense<0.000000e+00> : vector<2x128xf32>
    %52 = tpu.matmul %51, %1, %cst_14 {dimension_numbers = #tpu.dot_dimension_numbers<[1], [0], [0], [1], [0, 0, 1, 1], [], []>} : vector<2x64xbf16>, vector<64x128xbf16>, vector<2x128xf32> -> vector<2x128xf32>
    %53 = arith.addf %52, %4 : vector<2x128xf32>
    %54 = arith.negf %53 : vector<2x128xf32>
    %55 = math.exp %54 : vector<2x128xf32>
    %cst_15 = arith.constant 1.000000e+00 : f32
    %56 = vector.broadcast %cst_15 : f32 to vector<2x128xf32>
    %57 = arith.addf %56, %55 : vector<2x128xf32>
    %58 = arith.divf %56, %57 : vector<2x128xf32>
    %59 = math.tanh %53 : vector<2x128xf32>
    %60 = vector.extract_strided_slice %58 {offsets = [0, 0], sizes = [2, 32], strides = [1, 1]} : vector<2x128xf32> to vector<2x32xf32>
    %61 = vector.extract_strided_slice %58 {offsets = [0, 32], sizes = [2, 32], strides = [1, 1]} : vector<2x128xf32> to vector<2x32xf32>
    %62 = vector.extract_strided_slice %59 {offsets = [0, 64], sizes = [2, 32], strides = [1, 1]} : vector<2x128xf32> to vector<2x32xf32>
    %63 = vector.extract_strided_slice %58 {offsets = [0, 96], sizes = [2, 32], strides = [1, 1]} : vector<2x128xf32> to vector<2x32xf32>
    %64 = arith.mulf %61, %31 : vector<2x32xf32>
    %65 = arith.mulf %60, %62 : vector<2x32xf32>
    %66 = arith.addf %64, %65 : vector<2x32xf32>
    %67 = math.tanh %66 : vector<2x32xf32>
    %68 = arith.mulf %63, %67 : vector<2x32xf32>
    %69 = arith.truncf %49 : vector<2x32xf32> to vector<2x32xbf16>
    %cst_16 = arith.constant dense<0.000000e+00> : vector<2x128xf32>
    %70 = tpu.matmul %69, %0, %cst_16 {dimension_numbers = #tpu.dot_dimension_numbers<[1], [0], [0], [1], [0, 0, 1, 1], [], []>} : vector<2x32xbf16>, vector<32x128xbf16>, vector<2x128xf32> -> vector<2x128xf32>
    %71 = arith.addf %18, %70 : vector<2x128xf32>
    %72 = arith.negf %71 : vector<2x128xf32>
    %73 = math.exp %72 : vector<2x128xf32>
    %cst_17 = arith.constant 1.000000e+00 : f32
    %74 = vector.broadcast %cst_17 : f32 to vector<2x128xf32>
    %75 = arith.addf %74, %73 : vector<2x128xf32>
    %76 = arith.divf %74, %75 : vector<2x128xf32>
    %77 = math.tanh %71 : vector<2x128xf32>
    %78 = vector.extract_strided_slice %76 {offsets = [0, 0], sizes = [2, 32], strides = [1, 1]} : vector<2x128xf32> to vector<2x32xf32>
    %79 = vector.extract_strided_slice %76 {offsets = [0, 32], sizes = [2, 32], strides = [1, 1]} : vector<2x128xf32> to vector<2x32xf32>
    %80 = vector.extract_strided_slice %77 {offsets = [0, 64], sizes = [2, 32], strides = [1, 1]} : vector<2x128xf32> to vector<2x32xf32>
    %81 = vector.extract_strided_slice %76 {offsets = [0, 96], sizes = [2, 32], strides = [1, 1]} : vector<2x128xf32> to vector<2x32xf32>
    %82 = arith.mulf %79, %47 : vector<2x32xf32>
    %83 = arith.mulf %78, %80 : vector<2x32xf32>
    %84 = arith.addf %82, %83 : vector<2x32xf32>
    %85 = math.tanh %84 : vector<2x32xf32>
    %86 = arith.mulf %81, %85 : vector<2x32xf32>
    %87 = tpu.concatenate %86, %68 in 1 : vector<2x32xf32>, vector<2x32xf32> -> vector<2x64xf32>
    %88 = arith.truncf %87 : vector<2x64xf32> to vector<2x64xbf16>
    %cst_18 = arith.constant dense<0.000000e+00> : vector<2x128xf32>
    %89 = tpu.matmul %88, %1, %cst_18 {dimension_numbers = #tpu.dot_dimension_numbers<[1], [0], [0], [1], [0, 0, 1, 1], [], []>} : vector<2x64xbf16>, vector<64x128xbf16>, vector<2x128xf32> -> vector<2x128xf32>
    %90 = arith.addf %89, %4 : vector<2x128xf32>
    %91 = arith.negf %90 : vector<2x128xf32>
    %92 = math.exp %91 : vector<2x128xf32>
    %cst_19 = arith.constant 1.000000e+00 : f32
    %93 = vector.broadcast %cst_19 : f32 to vector<2x128xf32>
    %94 = arith.addf %93, %92 : vector<2x128xf32>
    %95 = arith.divf %93, %94 : vector<2x128xf32>
    %96 = math.tanh %90 : vector<2x128xf32>
    %97 = vector.extract_strided_slice %95 {offsets = [0, 0], sizes = [2, 32], strides = [1, 1]} : vector<2x128xf32> to vector<2x32xf32>
    %98 = vector.extract_strided_slice %95 {offsets = [0, 32], sizes = [2, 32], strides = [1, 1]} : vector<2x128xf32> to vector<2x32xf32>
    %99 = vector.extract_strided_slice %96 {offsets = [0, 64], sizes = [2, 32], strides = [1, 1]} : vector<2x128xf32> to vector<2x32xf32>
    %100 = vector.extract_strided_slice %95 {offsets = [0, 96], sizes = [2, 32], strides = [1, 1]} : vector<2x128xf32> to vector<2x32xf32>
    %101 = arith.mulf %98, %66 : vector<2x32xf32>
    %102 = arith.mulf %97, %99 : vector<2x32xf32>
    %103 = arith.addf %101, %102 : vector<2x32xf32>
    %104 = math.tanh %103 : vector<2x32xf32>
    %105 = arith.mulf %100, %104 : vector<2x32xf32>
    %106 = arith.truncf %86 : vector<2x32xf32> to vector<2x32xbf16>
    %cst_20 = arith.constant dense<0.000000e+00> : vector<2x128xf32>
    %107 = tpu.matmul %106, %0, %cst_20 {dimension_numbers = #tpu.dot_dimension_numbers<[1], [0], [0], [1], [0, 0, 1, 1], [], []>} : vector<2x32xbf16>, vector<32x128xbf16>, vector<2x128xf32> -> vector<2x128xf32>
    %108 = arith.addf %20, %107 : vector<2x128xf32>
    %109 = arith.negf %108 : vector<2x128xf32>
    %110 = math.exp %109 : vector<2x128xf32>
    %cst_21 = arith.constant 1.000000e+00 : f32
    %111 = vector.broadcast %cst_21 : f32 to vector<2x128xf32>
    %112 = arith.addf %111, %110 : vector<2x128xf32>
    %113 = arith.divf %111, %112 : vector<2x128xf32>
    %114 = math.tanh %108 : vector<2x128xf32>
    %115 = vector.extract_strided_slice %113 {offsets = [0, 0], sizes = [2, 32], strides = [1, 1]} : vector<2x128xf32> to vector<2x32xf32>
    %116 = vector.extract_strided_slice %113 {offsets = [0, 32], sizes = [2, 32], strides = [1, 1]} : vector<2x128xf32> to vector<2x32xf32>
    %117 = vector.extract_strided_slice %114 {offsets = [0, 64], sizes = [2, 32], strides = [1, 1]} : vector<2x128xf32> to vector<2x32xf32>
    %118 = vector.extract_strided_slice %113 {offsets = [0, 96], sizes = [2, 32], strides = [1, 1]} : vector<2x128xf32> to vector<2x32xf32>
    %119 = arith.mulf %116, %84 : vector<2x32xf32>
    %120 = arith.mulf %115, %117 : vector<2x32xf32>
    %121 = arith.addf %119, %120 : vector<2x32xf32>
    %122 = math.tanh %121 : vector<2x32xf32>
    %123 = arith.mulf %118, %122 : vector<2x32xf32>
    %124 = tpu.concatenate %123, %105 in 1 : vector<2x32xf32>, vector<2x32xf32> -> vector<2x64xf32>
    %125 = arith.truncf %124 : vector<2x64xf32> to vector<2x64xbf16>
    %cst_22 = arith.constant dense<0.000000e+00> : vector<2x128xf32>
    %126 = tpu.matmul %125, %1, %cst_22 {dimension_numbers = #tpu.dot_dimension_numbers<[1], [0], [0], [1], [0, 0, 1, 1], [], []>} : vector<2x64xbf16>, vector<64x128xbf16>, vector<2x128xf32> -> vector<2x128xf32>
    %127 = arith.addf %126, %4 : vector<2x128xf32>
    %128 = arith.negf %127 : vector<2x128xf32>
    %129 = math.exp %128 : vector<2x128xf32>
    %cst_23 = arith.constant 1.000000e+00 : f32
    %130 = vector.broadcast %cst_23 : f32 to vector<2x128xf32>
    %131 = arith.addf %130, %129 : vector<2x128xf32>
    %132 = arith.divf %130, %131 : vector<2x128xf32>
    %133 = math.tanh %127 : vector<2x128xf32>
    %134 = vector.extract_strided_slice %132 {offsets = [0, 0], sizes = [2, 32], strides = [1, 1]} : vector<2x128xf32> to vector<2x32xf32>
    %135 = vector.extract_strided_slice %132 {offsets = [0, 32], sizes = [2, 32], strides = [1, 1]} : vector<2x128xf32> to vector<2x32xf32>
    %136 = vector.extract_strided_slice %133 {offsets = [0, 64], sizes = [2, 32], strides = [1, 1]} : vector<2x128xf32> to vector<2x32xf32>
    %137 = vector.extract_strided_slice %132 {offsets = [0, 96], sizes = [2, 32], strides = [1, 1]} : vector<2x128xf32> to vector<2x32xf32>
    %138 = arith.mulf %135, %103 : vector<2x32xf32>
    %139 = arith.mulf %134, %136 : vector<2x32xf32>
    %140 = arith.addf %138, %139 : vector<2x32xf32>
    %141 = math.tanh %140 : vector<2x32xf32>
    %142 = arith.mulf %137, %141 : vector<2x32xf32>
    %143 = arith.truncf %123 : vector<2x32xf32> to vector<2x32xbf16>
    %cst_24 = arith.constant dense<0.000000e+00> : vector<2x128xf32>
    %144 = tpu.matmul %143, %0, %cst_24 {dimension_numbers = #tpu.dot_dimension_numbers<[1], [0], [0], [1], [0, 0, 1, 1], [], []>} : vector<2x32xbf16>, vector<32x128xbf16>, vector<2x128xf32> -> vector<2x128xf32>
    %145 = arith.addf %22, %144 : vector<2x128xf32>
    %146 = arith.negf %145 : vector<2x128xf32>
    %147 = math.exp %146 : vector<2x128xf32>
    %cst_25 = arith.constant 1.000000e+00 : f32
    %148 = vector.broadcast %cst_25 : f32 to vector<2x128xf32>
    %149 = arith.addf %148, %147 : vector<2x128xf32>
    %150 = arith.divf %148, %149 : vector<2x128xf32>
    %151 = math.tanh %145 : vector<2x128xf32>
    %152 = vector.extract_strided_slice %150 {offsets = [0, 0], sizes = [2, 32], strides = [1, 1]} : vector<2x128xf32> to vector<2x32xf32>
    %153 = vector.extract_strided_slice %150 {offsets = [0, 32], sizes = [2, 32], strides = [1, 1]} : vector<2x128xf32> to vector<2x32xf32>
    %154 = vector.extract_strided_slice %151 {offsets = [0, 64], sizes = [2, 32], strides = [1, 1]} : vector<2x128xf32> to vector<2x32xf32>
    %155 = vector.extract_strided_slice %150 {offsets = [0, 96], sizes = [2, 32], strides = [1, 1]} : vector<2x128xf32> to vector<2x32xf32>
    %156 = arith.mulf %153, %121 : vector<2x32xf32>
    %157 = arith.mulf %152, %154 : vector<2x32xf32>
    %158 = arith.addf %156, %157 : vector<2x32xf32>
    %159 = math.tanh %158 : vector<2x32xf32>
    %160 = arith.mulf %155, %159 : vector<2x32xf32>
    %161 = tpu.concatenate %160, %142 in 1 : vector<2x32xf32>, vector<2x32xf32> -> vector<2x64xf32>
    %162 = arith.truncf %161 : vector<2x64xf32> to vector<2x64xbf16>
    %cst_26 = arith.constant dense<0.000000e+00> : vector<2x128xf32>
    %163 = tpu.matmul %162, %1, %cst_26 {dimension_numbers = #tpu.dot_dimension_numbers<[1], [0], [0], [1], [0, 0, 1, 1], [], []>} : vector<2x64xbf16>, vector<64x128xbf16>, vector<2x128xf32> -> vector<2x128xf32>
    %164 = arith.addf %163, %4 : vector<2x128xf32>
    %165 = arith.negf %164 : vector<2x128xf32>
    %166 = math.exp %165 : vector<2x128xf32>
    %cst_27 = arith.constant 1.000000e+00 : f32
    %167 = vector.broadcast %cst_27 : f32 to vector<2x128xf32>
    %168 = arith.addf %167, %166 : vector<2x128xf32>
    %169 = arith.divf %167, %168 : vector<2x128xf32>
    %170 = math.tanh %164 : vector<2x128xf32>
    %171 = vector.extract_strided_slice %169 {offsets = [0, 0], sizes = [2, 32], strides = [1, 1]} : vector<2x128xf32> to vector<2x32xf32>
    %172 = vector.extract_strided_slice %169 {offsets = [0, 32], sizes = [2, 32], strides = [1, 1]} : vector<2x128xf32> to vector<2x32xf32>
    %173 = vector.extract_strided_slice %170 {offsets = [0, 64], sizes = [2, 32], strides = [1, 1]} : vector<2x128xf32> to vector<2x32xf32>
    %174 = vector.extract_strided_slice %169 {offsets = [0, 96], sizes = [2, 32], strides = [1, 1]} : vector<2x128xf32> to vector<2x32xf32>
    %175 = arith.mulf %172, %140 : vector<2x32xf32>
    %176 = arith.mulf %171, %173 : vector<2x32xf32>
    %177 = arith.addf %175, %176 : vector<2x32xf32>
    %178 = math.tanh %177 : vector<2x32xf32>
    %179 = arith.mulf %174, %178 : vector<2x32xf32>
    %180 = arith.truncf %160 : vector<2x32xf32> to vector<2x32xbf16>
    %cst_28 = arith.constant dense<0.000000e+00> : vector<2x128xf32>
    %181 = tpu.matmul %180, %0, %cst_28 {dimension_numbers = #tpu.dot_dimension_numbers<[1], [0], [0], [1], [0, 0, 1, 1], [], []>} : vector<2x32xbf16>, vector<32x128xbf16>, vector<2x128xf32> -> vector<2x128xf32>
    %182 = arith.addf %24, %181 : vector<2x128xf32>
    %183 = arith.negf %182 : vector<2x128xf32>
    %184 = math.exp %183 : vector<2x128xf32>
    %cst_29 = arith.constant 1.000000e+00 : f32
    %185 = vector.broadcast %cst_29 : f32 to vector<2x128xf32>
    %186 = arith.addf %185, %184 : vector<2x128xf32>
    %187 = arith.divf %185, %186 : vector<2x128xf32>
    %188 = math.tanh %182 : vector<2x128xf32>
    %189 = vector.extract_strided_slice %187 {offsets = [0, 0], sizes = [2, 32], strides = [1, 1]} : vector<2x128xf32> to vector<2x32xf32>
    %190 = vector.extract_strided_slice %187 {offsets = [0, 32], sizes = [2, 32], strides = [1, 1]} : vector<2x128xf32> to vector<2x32xf32>
    %191 = vector.extract_strided_slice %188 {offsets = [0, 64], sizes = [2, 32], strides = [1, 1]} : vector<2x128xf32> to vector<2x32xf32>
    %192 = vector.extract_strided_slice %187 {offsets = [0, 96], sizes = [2, 32], strides = [1, 1]} : vector<2x128xf32> to vector<2x32xf32>
    %193 = arith.mulf %190, %158 : vector<2x32xf32>
    %194 = arith.mulf %189, %191 : vector<2x32xf32>
    %195 = arith.addf %193, %194 : vector<2x32xf32>
    %196 = math.tanh %195 : vector<2x32xf32>
    %197 = arith.mulf %192, %196 : vector<2x32xf32>
    %198 = tpu.concatenate %197, %179 in 1 : vector<2x32xf32>, vector<2x32xf32> -> vector<2x64xf32>
    %199 = arith.truncf %198 : vector<2x64xf32> to vector<2x64xbf16>
    %cst_30 = arith.constant dense<0.000000e+00> : vector<2x128xf32>
    %200 = tpu.matmul %199, %1, %cst_30 {dimension_numbers = #tpu.dot_dimension_numbers<[1], [0], [0], [1], [0, 0, 1, 1], [], []>} : vector<2x64xbf16>, vector<64x128xbf16>, vector<2x128xf32> -> vector<2x128xf32>
    %201 = arith.addf %200, %4 : vector<2x128xf32>
    %202 = arith.negf %201 : vector<2x128xf32>
    %203 = math.exp %202 : vector<2x128xf32>
    %cst_31 = arith.constant 1.000000e+00 : f32
    %204 = vector.broadcast %cst_31 : f32 to vector<2x128xf32>
    %205 = arith.addf %204, %203 : vector<2x128xf32>
    %206 = arith.divf %204, %205 : vector<2x128xf32>
    %207 = math.tanh %201 : vector<2x128xf32>
    %208 = vector.extract_strided_slice %206 {offsets = [0, 0], sizes = [2, 32], strides = [1, 1]} : vector<2x128xf32> to vector<2x32xf32>
    %209 = vector.extract_strided_slice %206 {offsets = [0, 32], sizes = [2, 32], strides = [1, 1]} : vector<2x128xf32> to vector<2x32xf32>
    %210 = vector.extract_strided_slice %207 {offsets = [0, 64], sizes = [2, 32], strides = [1, 1]} : vector<2x128xf32> to vector<2x32xf32>
    %211 = vector.extract_strided_slice %206 {offsets = [0, 96], sizes = [2, 32], strides = [1, 1]} : vector<2x128xf32> to vector<2x32xf32>
    %212 = arith.mulf %209, %177 : vector<2x32xf32>
    %213 = arith.mulf %208, %210 : vector<2x32xf32>
    %214 = arith.addf %212, %213 : vector<2x32xf32>
    %215 = math.tanh %214 : vector<2x32xf32>
    %216 = arith.mulf %211, %215 : vector<2x32xf32>
    %217 = arith.truncf %197 : vector<2x32xf32> to vector<2x32xbf16>
    %cst_32 = arith.constant dense<0.000000e+00> : vector<2x128xf32>
    %218 = tpu.matmul %217, %0, %cst_32 {dimension_numbers = #tpu.dot_dimension_numbers<[1], [0], [0], [1], [0, 0, 1, 1], [], []>} : vector<2x32xbf16>, vector<32x128xbf16>, vector<2x128xf32> -> vector<2x128xf32>
    %219 = arith.addf %26, %218 : vector<2x128xf32>
    %220 = arith.negf %219 : vector<2x128xf32>
    %221 = math.exp %220 : vector<2x128xf32>
    %cst_33 = arith.constant 1.000000e+00 : f32
    %222 = vector.broadcast %cst_33 : f32 to vector<2x128xf32>
    %223 = arith.addf %222, %221 : vector<2x128xf32>
    %224 = arith.divf %222, %223 : vector<2x128xf32>
    %225 = math.tanh %219 : vector<2x128xf32>
    %226 = vector.extract_strided_slice %224 {offsets = [0, 0], sizes = [2, 32], strides = [1, 1]} : vector<2x128xf32> to vector<2x32xf32>
    %227 = vector.extract_strided_slice %224 {offsets = [0, 32], sizes = [2, 32], strides = [1, 1]} : vector<2x128xf32> to vector<2x32xf32>
    %228 = vector.extract_strided_slice %225 {offsets = [0, 64], sizes = [2, 32], strides = [1, 1]} : vector<2x128xf32> to vector<2x32xf32>
    %229 = vector.extract_strided_slice %224 {offsets = [0, 96], sizes = [2, 32], strides = [1, 1]} : vector<2x128xf32> to vector<2x32xf32>
    %230 = arith.mulf %227, %195 : vector<2x32xf32>
    %231 = arith.mulf %226, %228 : vector<2x32xf32>
    %232 = arith.addf %230, %231 : vector<2x32xf32>
    %233 = math.tanh %232 : vector<2x32xf32>
    %234 = arith.mulf %229, %233 : vector<2x32xf32>
    %235 = tpu.concatenate %234, %216 in 1 : vector<2x32xf32>, vector<2x32xf32> -> vector<2x64xf32>
    %236 = arith.truncf %235 : vector<2x64xf32> to vector<2x64xbf16>
    %cst_34 = arith.constant dense<0.000000e+00> : vector<2x128xf32>
    %237 = tpu.matmul %236, %1, %cst_34 {dimension_numbers = #tpu.dot_dimension_numbers<[1], [0], [0], [1], [0, 0, 1, 1], [], []>} : vector<2x64xbf16>, vector<64x128xbf16>, vector<2x128xf32> -> vector<2x128xf32>
    %238 = arith.addf %237, %4 : vector<2x128xf32>
    %239 = arith.negf %238 : vector<2x128xf32>
    %240 = math.exp %239 : vector<2x128xf32>
    %cst_35 = arith.constant 1.000000e+00 : f32
    %241 = vector.broadcast %cst_35 : f32 to vector<2x128xf32>
    %242 = arith.addf %241, %240 : vector<2x128xf32>
    %243 = arith.divf %241, %242 : vector<2x128xf32>
    %244 = math.tanh %238 : vector<2x128xf32>
    %245 = vector.extract_strided_slice %243 {offsets = [0, 0], sizes = [2, 32], strides = [1, 1]} : vector<2x128xf32> to vector<2x32xf32>
    %246 = vector.extract_strided_slice %243 {offsets = [0, 32], sizes = [2, 32], strides = [1, 1]} : vector<2x128xf32> to vector<2x32xf32>
    %247 = vector.extract_strided_slice %244 {offsets = [0, 64], sizes = [2, 32], strides = [1, 1]} : vector<2x128xf32> to vector<2x32xf32>
    %248 = vector.extract_strided_slice %243 {offsets = [0, 96], sizes = [2, 32], strides = [1, 1]} : vector<2x128xf32> to vector<2x32xf32>
    %249 = arith.mulf %246, %214 : vector<2x32xf32>
    %250 = arith.mulf %245, %247 : vector<2x32xf32>
    %251 = arith.addf %249, %250 : vector<2x32xf32>
    %252 = math.tanh %251 : vector<2x32xf32>
    %253 = arith.mulf %248, %252 : vector<2x32xf32>
    %254 = arith.truncf %234 : vector<2x32xf32> to vector<2x32xbf16>
    %cst_36 = arith.constant dense<0.000000e+00> : vector<2x128xf32>
    %255 = tpu.matmul %254, %0, %cst_36 {dimension_numbers = #tpu.dot_dimension_numbers<[1], [0], [0], [1], [0, 0, 1, 1], [], []>} : vector<2x32xbf16>, vector<32x128xbf16>, vector<2x128xf32> -> vector<2x128xf32>
    %256 = arith.addf %28, %255 : vector<2x128xf32>
    %257 = arith.negf %256 : vector<2x128xf32>
    %258 = math.exp %257 : vector<2x128xf32>
    %cst_37 = arith.constant 1.000000e+00 : f32
    %259 = vector.broadcast %cst_37 : f32 to vector<2x128xf32>
    %260 = arith.addf %259, %258 : vector<2x128xf32>
    %261 = arith.divf %259, %260 : vector<2x128xf32>
    %262 = math.tanh %256 : vector<2x128xf32>
    %263 = vector.extract_strided_slice %261 {offsets = [0, 0], sizes = [2, 32], strides = [1, 1]} : vector<2x128xf32> to vector<2x32xf32>
    %264 = vector.extract_strided_slice %261 {offsets = [0, 32], sizes = [2, 32], strides = [1, 1]} : vector<2x128xf32> to vector<2x32xf32>
    %265 = vector.extract_strided_slice %262 {offsets = [0, 64], sizes = [2, 32], strides = [1, 1]} : vector<2x128xf32> to vector<2x32xf32>
    %266 = vector.extract_strided_slice %261 {offsets = [0, 96], sizes = [2, 32], strides = [1, 1]} : vector<2x128xf32> to vector<2x32xf32>
    %267 = arith.mulf %264, %232 : vector<2x32xf32>
    %268 = arith.mulf %263, %265 : vector<2x32xf32>
    %269 = arith.addf %267, %268 : vector<2x32xf32>
    %270 = math.tanh %269 : vector<2x32xf32>
    %271 = arith.mulf %266, %270 : vector<2x32xf32>
    %272 = tpu.concatenate %271, %253 in 1 : vector<2x32xf32>, vector<2x32xf32> -> vector<2x64xf32>
    %273 = arith.truncf %272 : vector<2x64xf32> to vector<2x64xbf16>
    %cst_38 = arith.constant dense<0.000000e+00> : vector<2x128xf32>
    %274 = tpu.matmul %273, %1, %cst_38 {dimension_numbers = #tpu.dot_dimension_numbers<[1], [0], [0], [1], [0, 0, 1, 1], [], []>} : vector<2x64xbf16>, vector<64x128xbf16>, vector<2x128xf32> -> vector<2x128xf32>
    %275 = arith.addf %274, %4 : vector<2x128xf32>
    %276 = arith.negf %275 : vector<2x128xf32>
    %277 = math.exp %276 : vector<2x128xf32>
    %cst_39 = arith.constant 1.000000e+00 : f32
    %278 = vector.broadcast %cst_39 : f32 to vector<2x128xf32>
    %279 = arith.addf %278, %277 : vector<2x128xf32>
    %280 = arith.divf %278, %279 : vector<2x128xf32>
    %281 = math.tanh %275 : vector<2x128xf32>
    %282 = vector.extract_strided_slice %280 {offsets = [0, 0], sizes = [2, 32], strides = [1, 1]} : vector<2x128xf32> to vector<2x32xf32>
    %283 = vector.extract_strided_slice %280 {offsets = [0, 32], sizes = [2, 32], strides = [1, 1]} : vector<2x128xf32> to vector<2x32xf32>
    %284 = vector.extract_strided_slice %281 {offsets = [0, 64], sizes = [2, 32], strides = [1, 1]} : vector<2x128xf32> to vector<2x32xf32>
    %285 = vector.extract_strided_slice %280 {offsets = [0, 96], sizes = [2, 32], strides = [1, 1]} : vector<2x128xf32> to vector<2x32xf32>
    %286 = arith.mulf %283, %251 : vector<2x32xf32>
    %287 = arith.mulf %282, %284 : vector<2x32xf32>
    %288 = arith.addf %286, %287 : vector<2x32xf32>
    %289 = math.tanh %288 : vector<2x32xf32>
    %290 = arith.mulf %285, %289 : vector<2x32xf32>
    %291 = arith.truncf %271 : vector<2x32xf32> to vector<2x32xbf16>
    %cst_40 = arith.constant dense<0.000000e+00> : vector<2x128xf32>
    %292 = tpu.matmul %291, %0, %cst_40 {dimension_numbers = #tpu.dot_dimension_numbers<[1], [0], [0], [1], [0, 0, 1, 1], [], []>} : vector<2x32xbf16>, vector<32x128xbf16>, vector<2x128xf32> -> vector<2x128xf32>
    %293 = arith.addf %30, %292 : vector<2x128xf32>
    %294 = arith.negf %293 : vector<2x128xf32>
    %295 = math.exp %294 : vector<2x128xf32>
    %cst_41 = arith.constant 1.000000e+00 : f32
    %296 = vector.broadcast %cst_41 : f32 to vector<2x128xf32>
    %297 = arith.addf %296, %295 : vector<2x128xf32>
    %298 = arith.divf %296, %297 : vector<2x128xf32>
    %299 = math.tanh %293 : vector<2x128xf32>
    %300 = vector.extract_strided_slice %298 {offsets = [0, 0], sizes = [2, 32], strides = [1, 1]} : vector<2x128xf32> to vector<2x32xf32>
    %301 = vector.extract_strided_slice %298 {offsets = [0, 32], sizes = [2, 32], strides = [1, 1]} : vector<2x128xf32> to vector<2x32xf32>
    %302 = vector.extract_strided_slice %299 {offsets = [0, 64], sizes = [2, 32], strides = [1, 1]} : vector<2x128xf32> to vector<2x32xf32>
    %303 = vector.extract_strided_slice %298 {offsets = [0, 96], sizes = [2, 32], strides = [1, 1]} : vector<2x128xf32> to vector<2x32xf32>
    %304 = arith.mulf %301, %269 : vector<2x32xf32>
    %305 = arith.mulf %300, %302 : vector<2x32xf32>
    %306 = arith.addf %304, %305 : vector<2x32xf32>
    %307 = math.tanh %306 : vector<2x32xf32>
    %308 = arith.mulf %303, %307 : vector<2x32xf32>
    %309 = tpu.concatenate %308, %290 in 1 : vector<2x32xf32>, vector<2x32xf32> -> vector<2x64xf32>
    %310 = arith.truncf %309 : vector<2x64xf32> to vector<2x64xbf16>
    %cst_42 = arith.constant dense<0.000000e+00> : vector<2x128xf32>
    %311 = tpu.matmul %310, %1, %cst_42 {dimension_numbers = #tpu.dot_dimension_numbers<[1], [0], [0], [1], [0, 0, 1, 1], [], []>} : vector<2x64xbf16>, vector<64x128xbf16>, vector<2x128xf32> -> vector<2x128xf32>
    %312 = arith.addf %311, %4 : vector<2x128xf32>
    %313 = arith.negf %312 : vector<2x128xf32>
    %314 = math.exp %313 : vector<2x128xf32>
    %cst_43 = arith.constant 1.000000e+00 : f32
    %315 = vector.broadcast %cst_43 : f32 to vector<2x128xf32>
    %316 = arith.addf %315, %314 : vector<2x128xf32>
    %317 = arith.divf %315, %316 : vector<2x128xf32>
    %318 = math.tanh %312 : vector<2x128xf32>
    %319 = vector.extract_strided_slice %317 {offsets = [0, 0], sizes = [2, 32], strides = [1, 1]} : vector<2x128xf32> to vector<2x32xf32>
    %320 = vector.extract_strided_slice %317 {offsets = [0, 32], sizes = [2, 32], strides = [1, 1]} : vector<2x128xf32> to vector<2x32xf32>
    %321 = vector.extract_strided_slice %318 {offsets = [0, 64], sizes = [2, 32], strides = [1, 1]} : vector<2x128xf32> to vector<2x32xf32>
    %322 = vector.extract_strided_slice %317 {offsets = [0, 96], sizes = [2, 32], strides = [1, 1]} : vector<2x128xf32> to vector<2x32xf32>
    %323 = arith.mulf %320, %288 : vector<2x32xf32>
    %324 = arith.mulf %319, %321 : vector<2x32xf32>
    %325 = arith.addf %323, %324 : vector<2x32xf32>
    %326 = math.tanh %325 : vector<2x32xf32>
    %327 = arith.mulf %322, %326 : vector<2x32xf32>
    %328 = arith.truncf %327 : vector<2x32xf32> to vector<2x32xbf16>
    %c0_44 = arith.constant 0 : index
    %c0_45 = arith.constant 0 : index
    %329 = vector.load %arg6[%c0_44, %c0_45] : memref<32x1xbf16, #tpu.memory_space<vmem>>, vector<32x1xbf16>
    %cst_46 = arith.constant dense<0.000000e+00> : vector<2x1xf32>
    %330 = tpu.matmul %328, %329, %cst_46 {dimension_numbers = #tpu.dot_dimension_numbers<[1], [0], [0], [1], [0, 0, 1, 1], [], []>} : vector<2x32xbf16>, vector<32x1xbf16>, vector<2x1xf32> -> vector<2x1xf32>
    %c0_47 = arith.constant 0 : index
    %c0_48 = arith.constant 0 : index
    %331 = vector.load %arg7[%c0_47, %c0_48] : memref<1x1xf32, #tpu.memory_space<vmem>>, vector<1x1xf32>
    %332 = vector.broadcast %331 : vector<1x1xf32> to vector<2x1xf32>
    %333 = arith.addf %330, %332 : vector<2x1xf32>
    %c0_49 = arith.constant 0 : index
    %c0_50 = arith.constant 0 : index
    %334 = vector.load %arg8[%c0_49, %c0_50] : memref<2x1xf32, #tpu.memory_space<vmem>>, vector<2x1xf32>
    tpu.vector_store %arg8[%c0_49, %c0_50], %333 {strides = array<i32>} : memref<2x1xf32, #tpu.memory_space<vmem>>, vector<2x1xf32>,
    return
  }
}

</mosaic_0001>

<bundles_post_ra>
// kernel: lstm_regressor_forward.1
= control target key start
LH: loop header
LB: loop body
LE: loop exit
PB: predicated region body
PF: predicated region fallthrough
CT: control target
= control target key end

     0   :  { %v1853_v0 = vmov 0.0   ;;  %vm1854_vm0 = vmmov 0   ;;  %v1855_v2 = vmov 0   ;;  %s1856_s14 = smov 64   ;;  %s1857_s15 = smov 32   ;;  %vm141_vm1 = vcmask 261120   ;;  %s2297_s3 = inlined_call_operand.vmem [shape: bf16[32,128], index: 3, kind: input, shape index: {}]   ;;  %s2298_s0 = inlined_call_operand.vmem [shape: f32[8,2,1], index: 0, kind: input, shape index: {}]   ;;  %s2299_s1 = inlined_call_operand.vmem [shape: f32[1,128], index: 1, kind: input, shape index: {}]   ;;  %s2300_s2 = inlined_call_operand.vmem [shape: f32[1,128], index: 2, kind: input, shape index: {}]   ;;  %s2301_s4 = inlined_call_operand.vmem [shape: bf16[64,128], index: 4, kind: input, shape index: {}]   ;;  %s2302_s5 = inlined_call_operand.vmem [shape: f32[1,128], index: 5, kind: input, shape index: {}]   ;;  %s2303_s6 = inlined_call_operand.vmem [shape: bf16[32,1], index: 6, kind: input, shape index: {}]   ;;  %s2304_s7 = inlined_call_operand.<no memory space> [shape: f32[1,1], index: 7, kind: input, shape index: {}]   ;;  %s2305_s8 = inlined_call_operand.vmem [shape: f32[2,1], index: 8, kind: output, shape index: {}]  }
   0x1   :  { %1538 = vmatprep.subr.bf16.mxu0 %v1853_v0  ;;  %v1907_v1 = vld [vmem:[%s2297_s3] sm:$0xff]   ;;  %1542 = vmatprep.mubr.msk.bf16.mxu0 %vm1854_vm0, %v1853_v0  ;;  %v1916_v3 = vld [vmem:[%s2297_s3 + $0x8] sm:$0xff]   ;;  %v1966_v28 = vld [vmem:[%s2301_s4 + $0x10] sm:$0xff]   ;;  %vm240_vm2 = vcmask 523264   ;;  %vm1421_vm3 = vcmask 1024  }
   0x2   :  { %1711 = vset.pattern.permute.xlu0 %v1855_v2  ;;  %1546 = vmatprep.subr.bf16.mxu1 %v1853_v0  ;;  %v53_v4 = vld [vmem:[%s2298_s0] sm:$0x3]  ;;  %v1958_v26 = vld [vmem:[%s2301_s4 + $0x8] sm:$0xff]   ;;  %v1974_v29 = vld [vmem:[%s2301_s4 + $0x18] sm:$0xff]  }
   0x3   :  { %1539 = vmatpush3.bf16.msra.mxu0 %v1907_v1  ;;  %1554 = vmatprep.mubr.msk.bf16.mxu1 %vm1854_vm0, %v1853_v0  ;;  %v1935_v5 = vld [vmem:[%s2299_s1] ss:$0 sm:$0xff]  ;;  %v54_v33 = vld [vmem:[%s2298_s0 + $0x2] sm:$0x3] }
   0x4   :  { %1540 = vmatprep.subr.bf16.mxu0 %v1853_v0  ;;  %63 = vperm.xlu0 %1711, %v53_v4   ;;  %v1941_v8 = vld [vmem:[%s2300_s2] ss:$0 sm:$0xff] }
   0x5   :  { %v1952_v25 = vld [vmem:[%s2301_s4] sm:$0xff]  }
   0x6   :  { %1547 = vmatpush3.bf16.msra.mxu1 %v1952_v25  ;;  %v2007_v41 = vld [vmem:[%s2302_s5] ss:$0 sm:$0xff] }
   0x7   :  { %1541 = vmatpush3.bf16.msra.mxu0 %v1916_v3  ;;  %1548 = vmatprep.subr.bf16.mxu1 %v1853_v0 }
   0x8   :  { %1558 = vmatprep.subr.bf16.mxu0 %v1853_v0 }
   0xa   :  { %1543 = vmatmul.mubr.bf16.vlgmr.msra.gmra.mrb[0].mxu0 %v1855_v2  ;;  %1549 = vmatpush3.bf16.msra.mxu1 %v1958_v26 }
   0xb   :  { %1559 = vmatpush3.bf16.msra.mxu0 %v1907_v1  ;;  %1562 = vmatprep.mubr.msk.bf16.mxu0 %vm1854_vm0, %v1853_v0 }
   0xc   :  { %1560 = vmatprep.subr.bf16.mxu0 %v1853_v0  ;;  %1550 = vmatprep.subr.bf16.mxu1 %v1853_v0 }
   0xe   :  { %1551 = vmatpush3.bf16.msra.mxu1 %v1966_v28 }
   0xf   :  { %1561 = vmatpush3.bf16.msra.mxu0 %v1916_v3  ;;  %1552 = vmatprep.subr.bf16.mxu1 %v1853_v0 }
  0x10   :  { %1566 = vmatprep.subr.bf16.mxu0 %v1853_v0 }
  0x12   :  { %1553 = vmatpush3.bf16.msra.mxu1 %v1974_v29 }
  0x13   :  { %1578 = vmatprep.subr.bf16.mxu1 %v1853_v0 }
  0x83   :  { %v64_v6 = vpop.permute.xlu0 %63 }
  0x84   :  { %v107_v7 = vmul.f32 %v1935_v5, %v64_v6 }
  0x86   :  { %v121_v9 = vadd.f32 %v1941_v8, %v107_v7 }
  0xdd   :  { %v179_v10 = vpop.f32.mrb[0].mxu0 }
  0xde   :  { %v185_v11 = vadd.f32 %v179_v10, %v121_v9  ;;  %v1544_v12 = vpop.f32.mrb[1].mxu0 }
  0xdf   :  { %v182_v13 = vpop.f32.mrb[2].mxu0 }
  0xe0   :  { %1720 = vtanh.f32 %v185_v11  ;;  %v1545_v14 = vpop.f32.mrb[3].mxu0  ;;  %v1432_v16 = vmul.f32 -1.442695, %v185_v11 }
  0xe2   :  { %1722 = vpow2.f32 %v1432_v16 }
  0xea   :  { %v1721_v15 = vpop.eup %1720 }
  0xeb   :  { %195 = vrot.lane.b32.xlu0 %v1721_v15, %s1856_s14 }
  0xec   :  { %v1723_v17 = vpop.eup %1722 }
  0xed   :  { %v189_v18 = vadd.f32 1.0, %v1723_v17 }
  0xef   :  { %1724 = vrcp.f32 %v189_v18 }
  0xf9   :  { %v1725_v19 = vpop.eup %1724 }
  0xfa   :  { %v193_v22 = vmul.f32 0.0, %v1725_v19 }
 0x15d   :  { %v196_v20 = vpop.permute.xlu0 %195 }
 0x15e   :  { %v198_v21 = vmul.f32 %v1725_v19, %v196_v20  ;;  %v55_v20 = vld [vmem:[%s2298_s0 + $0x4] sm:$0x3] }
 0x160   :  { %200 = vrot.lane.b32.xlu1 %v198_v21, %s1857_s15 }
 0x1d2   :  { %v201_v23 = vpop.permute.xlu1 %200 }
 0x1d3   :  { %v1946_v24 = vadd.f32 %v201_v23, %v193_v22 }
 0x1d5   :  { %1726 = vtanh.f32 %v1946_v24 }
 0x1df   :  { %v1727_v27 = vpop.eup %1726 }
 0x1e0   :  { %206 = vrot.lane.b32.xlu1 %v1727_v27, %s1856_s14 }
 0x252   :  { %v207_v30 = vpop.permute.xlu1 %206 }
 0x253   :  { %v209_v31 = vmul.f32 %v1725_v19, %v207_v30 }
 0x255   :  { %v308_v32 = vpack.c.bf16 %v209_v31, %v209_v31  ;;  %211 = vrot.lane.b32.xlu0 %v209_v31, %s1857_s15 }
 0x257   :  { %310 = vrot.lane.b32.xlu1 %v308_v32, %s1857_s15 }
 0x259   :  { %68 = vperm.xlu0 %1711, %v54_v33  }
 0x2c7   :  { %v212_v34 = vpop.permute.xlu0 %211 }
 0x2c8   :  { %v214_v35 = vsel %vm141_vm1, %v212_v34, 0.0 }
 0x2c9   :  { %v215_v36 = vpack.c.bf16 %v214_v35, %v214_v35  ;;  %v311_v37 = vpop.permute.xlu1 %310 }
 0x2ca   :  { %1563 = vmatmul.mubr.msk.bf16.vlgmr.msra.gmra.mrb[4].mxu0 %vm141_vm1, %v311_v37 }
 0x2cb   :  { %1555 = vmatmul.mubr.msk.bf16.vlgmr.msra.gmra.mrb[0].mxu1 %vm240_vm2, %v215_v36  ;;  %1567 = vmatpush3.bf16.msra.mxu0 %v1952_v25 }
 0x2cc   :  { %1568 = vmatprep.subr.bf16.mxu0 %v1853_v0  ;;  %1579 = vmatpush3.bf16.msra.mxu1 %v1907_v1 }
 0x2cd   :  { %1580 = vmatprep.subr.bf16.mxu1 %v1853_v0  ;;  %1574 = vmatprep.mubr.msk.bf16.mxu0 %vm1854_vm0, %v1853_v0 }
 0x2ce   :  { %1582 = vmatprep.mubr.msk.bf16.mxu1 %vm1854_vm0, %v1853_v0 }
 0x2cf   :  { %1569 = vmatpush3.bf16.msra.mxu0 %v1958_v26 }
 0x2d0   :  { %1570 = vmatprep.subr.bf16.mxu0 %v1853_v0  ;;  %1581 = vmatpush3.bf16.msra.mxu1 %v1916_v3 }
 0x2d1   :  { %1586 = vmatprep.subr.bf16.mxu1 %v1853_v0 }
 0x2d3   :  { %1571 = vmatpush3.bf16.msra.mxu0 %v1966_v28 }
 0x2d4   :  { %1572 = vmatprep.subr.bf16.mxu0 %v1853_v0 }
 0x2d7   :  { %1573 = vmatpush3.bf16.msra.mxu0 %v1974_v29 }
 0x2d8   :  { %1598 = vmatprep.subr.bf16.mxu0 %v1853_v0  ;;  %v69_v38 = vpop.permute.xlu0 %68 }
 0x2d9   :  { %v108_v39 = vmul.f32 %v1935_v5, %v69_v38 }
 0x2db   :  { %v122_v40 = vadd.f32 %v1941_v8, %v108_v39 }
 0x39d   :  { %v349_v42 = vpop.f32.mrb[4].mxu0 }
 0x39e   :  { %v355_v43 = vadd.f32 %v349_v42, %v122_v40  ;;  %v278_v44 = vpop.f32.mrb[0].mxu1  ;;  %v1564_v45 = vpop.f32.mrb[5].mxu0 }
 0x39f   :  { %v279_v46 = vadd.f32 %v2007_v41, %v278_v44  ;;  %v1556_v47 = vpop.f32.mrb[1].mxu1  ;;  %v352_v48 = vpop.f32.mrb[6].mxu0 }
 0x3a0   :  { %1728 = vtanh.f32 %v355_v43  ;;  %v281_v49 = vpop.f32.mrb[2].mxu1  ;;  %v1565_v50 = vpop.f32.mrb[7].mxu0  ;;  %v1440_v54 = vmul.f32 -1.442695, %v355_v43 }
 0x3a1   :  { %1730 = vtanh.f32 %v279_v46  ;;  %v1557_v51 = vpop.f32.mrb[3].mxu1  ;;  %v1438_v55 = vmul.f32 -1.442695, %v279_v46 }
 0x3a2   :  { %1732 = vpow2.f32 %v1440_v54 }
 0x3a3   :  { %1734 = vpow2.f32 %v1438_v55 }
 0x3aa   :  { %v1729_v52 = vpop.eup %1728 }
 0x3ab   :  { %v1731_v53 = vpop.eup %1730  ;;  %365 = vrot.lane.b32.xlu0 %v1729_v52, %s1856_s14 }
 0x3ac   :  { %293 = vrot.lane.b32.xlu1 %v1731_v53, %s1856_s14  ;;  %v1733_v56 = vpop.eup %1732 }
 0x3ad   :  { %v1735_v57 = vpop.eup %1734  ;;  %v359_v58 = vadd.f32 1.0, %v1733_v56 }
 0x3ae   :  { %v287_v59 = vadd.f32 1.0, %v1735_v57 }
 0x3af   :  { %1736 = vrcp.f32 %v359_v58 }
 0x3b0   :  { %1738 = vrcp.f32 %v287_v59 }
 0x3b9   :  { %v1737_v60 = vpop.eup %1736 }
 0x3ba   :  { %v1739_v62 = vpop.eup %1738  ;;  %v363_v6 = vmul.f32 %v1737_v60, %v1946_v24 }
 0x3bb   :  { %v291_v9 = vmul.f32 0.0, %v1739_v62 }
 0x41d   :  { %v366_v61 = vpop.permute.xlu0 %365 }
 0x41e   :  { %v368_v63 = vmul.f32 %v1737_v60, %v366_v61  ;;  %v294_v2 = vpop.permute.xlu1 %293 }
 0x41f   :  { %v296_v4 = vmul.f32 %v1739_v62, %v294_v2 }
 0x420   :  { %370 = vrot.lane.b32.xlu0 %v368_v63, %s1857_s15 }
 0x421   :  { %298 = vrot.lane.b32.xlu1 %v296_v4, %s1857_s15 }
 0x492   :  { %v371_v7 = vpop.permute.xlu0 %370 }
 0x493   :  { %v2015_v10 = vadd.f32 %v371_v7, %v363_v6  ;;  %v299_v11 = vpop.permute.xlu1 %298 }
 0x494   :  { %v2017_v12 = vadd.f32 %v299_v11, %v291_v9  ;;  %v56_v11 = vld [vmem:[%s2298_s0 + $0x6] sm:$0x3] }
 0x495   :  { %1740 = vtanh.f32 %v2015_v10 }
 0x496   :  { %1742 = vtanh.f32 %v2017_v12 }
 0x49f   :  { %v1741_v13 = vpop.eup %1740 }
 0x4a0   :  { %v1743_v14 = vpop.eup %1742  ;;  %376 = vrot.lane.b32.xlu0 %v1741_v13, %s1856_s14 }
 0x4a1   :  { %304 = vrot.lane.b32.xlu1 %v1743_v14, %s1856_s14 }
 0x512   :  { %v377_v15 = vpop.permute.xlu0 %376 }
 0x513   :  { %v379_v16 = vmul.f32 %v1737_v60, %v377_v15  ;;  %v305_v17 = vpop.permute.xlu1 %304 }
 0x514   :  { %v307_v18 = vmul.f32 %v1739_v62, %v305_v17 }
 0x515   :  { %381 = vrot.lane.b32.xlu1 %v379_v16, %s1857_s15  ;;  %v457_v19 = vpack.c.bf16 %v379_v16, %v379_v16 }
 0x516   :  { %385 = vrot.lane.b32.xlu0 %v307_v18, %s1856_s14 }
 0x519   :  { %459 = vrot.lane.b32.xlu1 %v457_v19, %s1857_s15 }
 0x51a   :  { %73 = vperm.xlu0 %1711, %v55_v20  }
 0x587   :  { %v382_v21 = vpop.permute.xlu1 %381 }
 0x588   :  { %v386_v22 = vpop.permute.xlu0 %385 }
 0x589   :  { %v388_v23 = vsel %vm141_vm1, %v382_v21, %v386_v22 }
 0x58a   :  { %v389_v24 = vpack.c.bf16 %v388_v23, %v388_v23 }
 0x58b   :  { %v460_v27 = vpop.permute.xlu1 %459 }
 0x58c   :  { %1575 = vmatmul.mubr.msk.bf16.vlgmr.msra.gmra.mrb[8].mxu0 %vm240_vm2, %v389_v24  ;;  %1583 = vmatmul.mubr.msk.bf16.vlgmr.msra.gmra.mrb[4].mxu1 %vm141_vm1, %v460_v27 }
 0x58d   :  { %1587 = vmatpush3.bf16.msra.mxu1 %v1952_v25  ;;  %1599 = vmatpush3.bf16.msra.mxu0 %v1907_v1 }
 0x58e   :  { %1588 = vmatprep.subr.bf16.mxu1 %v1853_v0  ;;  %1600 = vmatprep.subr.bf16.mxu0 %v1853_v0 }
 0x58f   :  { %1594 = vmatprep.mubr.msk.bf16.mxu1 %vm1854_vm0, %v1853_v0  ;;  %1602 = vmatprep.mubr.msk.bf16.mxu0 %vm1854_vm0, %v1853_v0 }
 0x591   :  { %1589 = vmatpush3.bf16.msra.mxu1 %v1958_v26  ;;  %1601 = vmatpush3.bf16.msra.mxu0 %v1916_v3 }
 0x592   :  { %1590 = vmatprep.subr.bf16.mxu1 %v1853_v0  ;;  %1606 = vmatprep.subr.bf16.mxu0 %v1853_v0 }
 0x595   :  { %1591 = vmatpush3.bf16.msra.mxu1 %v1966_v28 }
 0x596   :  { %1592 = vmatprep.subr.bf16.mxu1 %v1853_v0 }
 0x599   :  { %1593 = vmatpush3.bf16.msra.mxu1 %v1974_v29  ;;  %v74_v30 = vpop.permute.xlu0 %73 }
 0x59a   :  { %1618 = vmatprep.subr.bf16.mxu1 %v1853_v0  ;;  %v109_v31 = vmul.f32 %v1935_v5, %v74_v30 }
 0x59c   :  { %v123_v32 = vadd.f32 %v1941_v8, %v109_v31 }
 0x65f   :  { %v427_v33 = vpop.f32.mrb[8].mxu0  ;;  %v498_v34 = vpop.f32.mrb[4].mxu1 }
 0x660   :  { %v428_v35 = vadd.f32 %v2007_v41, %v427_v33  ;;  %v504_v36 = vadd.f32 %v498_v34, %v123_v32  ;;  %v1576_v37 = vpop.f32.mrb[9].mxu0  ;;  %v1584_v38 = vpop.f32.mrb[5].mxu1 }
 0x661   :  { %v430_v39 = vpop.f32.mrb[10].mxu0  ;;  %v501_v40 = vpop.f32.mrb[6].mxu1 }
 0x662   :  { %1744 = vtanh.f32 %v428_v35  ;;  %v1577_v42 = vpop.f32.mrb[11].mxu0  ;;  %v1585_v43 = vpop.f32.mrb[7].mxu1  ;;  %v1442_v46 = vmul.f32 -1.442695, %v428_v35  ;;  %v1444_v47 = vmul.f32 -1.442695, %v504_v36 }
 0x663   :  { %1746 = vtanh.f32 %v504_v36 }
 0x664   :  { %1748 = vpow2.f32 %v1442_v46 }
 0x665   :  { %1750 = vpow2.f32 %v1444_v47 }
 0x66c   :  { %v1745_v44 = vpop.eup %1744 }
 0x66d   :  { %v1747_v45 = vpop.eup %1746  ;;  %442 = vrot.lane.b32.xlu1 %v1745_v44, %s1856_s14 }
 0x66e   :  { %514 = vrot.lane.b32.xlu0 %v1747_v45, %s1856_s14  ;;  %v1749_v48 = vpop.eup %1748 }
 0x66f   :  { %v1751_v49 = vpop.eup %1750  ;;  %v436_v50 = vadd.f32 1.0, %v1749_v48 }
 0x670   :  { %v508_v51 = vadd.f32 1.0, %v1751_v49 }
 0x671   :  { %1752 = vrcp.f32 %v436_v50 }
 0x672   :  { %1754 = vrcp.f32 %v508_v51 }
 0x67b   :  { %v1753_v52 = vpop.eup %1752 }
 0x67c   :  { %v1755_v54 = vpop.eup %1754  ;;  %v440_v58 = vmul.f32 %v1753_v52, %v2017_v12 }
 0x67d   :  { %v512_v59 = vmul.f32 %v1755_v54, %v2015_v10 }
 0x6df   :  { %v443_v53 = vpop.permute.xlu1 %442 }
 0x6e0   :  { %v515_v55 = vpop.permute.xlu0 %514  ;;  %v445_v56 = vmul.f32 %v1753_v52, %v443_v53 }
 0x6e1   :  { %v517_v57 = vmul.f32 %v1755_v54, %v515_v55 }
 0x6e2   :  { %447 = vrot.lane.b32.xlu1 %v445_v56, %s1857_s15 }
 0x6e3   :  { %519 = vrot.lane.b32.xlu0 %v517_v57, %s1857_s15 }
 0x754   :  { %v448_v60 = vpop.permute.xlu1 %447 }
 0x755   :  { %v520_v61 = vpop.permute.xlu0 %519  ;;  %v2057_v62 = vadd.f32 %v448_v60, %v440_v58 }
 0x756   :  { %v2059_v63 = vadd.f32 %v520_v61, %v512_v59 }
 0x757   :  { %1756 = vtanh.f32 %v2057_v62 }
 0x758   :  { %1758 = vtanh.f32 %v2059_v63 }
 0x761   :  { %v1757_v2 = vpop.eup %1756 }
 0x762   :  { %v1759_v4 = vpop.eup %1758  ;;  %453 = vrot.lane.b32.xlu1 %v1757_v2, %s1856_s14 }
 0x763   :  { %525 = vrot.lane.b32.xlu0 %v1759_v4, %s1856_s14 }
 0x7d4   :  { %v454_v6 = vpop.permute.xlu1 %453 }
 0x7d5   :  { %v526_v7 = vpop.permute.xlu0 %525  ;;  %v456_v9 = vmul.f32 %v1753_v52, %v454_v6 }
 0x7d6   :  { %v528_v10 = vmul.f32 %v1755_v54, %v526_v7 }
 0x7d7   :  { %534 = vrot.lane.b32.xlu0 %v456_v9, %s1856_s14 }
 0x7d8   :  { %530 = vrot.lane.b32.xlu1 %v528_v10, %s1857_s15  ;;  %v606_v12 = vpack.c.bf16 %v528_v10, %v528_v10 }
 0x7db   :  { %78 = vperm.xlu0 %1711, %v56_v11  }
 0x7dc   :  { %608 = vrot.lane.b32.xlu1 %v606_v12, %s1857_s15 }
 0x849   :  { %v535_v13 = vpop.permute.xlu0 %534 }
 0x84a   :  { %v531_v14 = vpop.permute.xlu1 %530 }
 0x84b   :  { %v537_v15 = vsel %vm141_vm1, %v531_v14, %v535_v13 }
 0x84c   :  { %v538_v16 = vpack.c.bf16 %v537_v15, %v537_v15 }
 0x84e   :  { %1595 = vmatmul.mubr.msk.bf16.vlgmr.msra.gmra.mrb[8].mxu1 %vm240_vm2, %v538_v16  ;;  %v609_v17 = vpop.permute.xlu1 %608 }
 0x84f   :  { %1603 = vmatmul.mubr.msk.bf16.vlgmr.msra.gmra.mrb[12].mxu0 %vm141_vm1, %v609_v17  ;;  %1619 = vmatpush3.bf16.msra.mxu1 %v1907_v1 }
 0x850   :  { %1607 = vmatpush3.bf16.msra.mxu0 %v1952_v25  ;;  %1620 = vmatprep.subr.bf16.mxu1 %v1853_v0 }
 0x851   :  { %1608 = vmatprep.subr.bf16.mxu0 %v1853_v0  ;;  %1614 = vmatprep.mubr.msk.bf16.mxu0 %vm1854_vm0, %v1853_v0 }
 0x852   :  { %1622 = vmatprep.mubr.msk.bf16.mxu1 %vm1854_vm0, %v1853_v0 }
 0x853   :  { %1621 = vmatpush3.bf16.msra.mxu1 %v1916_v3 }
 0x854   :  { %1609 = vmatpush3.bf16.msra.mxu0 %v1958_v26  ;;  %1626 = vmatprep.subr.bf16.mxu1 %v1853_v0 }
 0x855   :  { %1610 = vmatprep.subr.bf16.mxu0 %v1853_v0 }
 0x858   :  { %1611 = vmatpush3.bf16.msra.mxu0 %v1966_v28 }
 0x859   :  { %1612 = vmatprep.subr.bf16.mxu0 %v1853_v0 }
 0x85a   :  { %v79_v18 = vpop.permute.xlu0 %78 }
 0x85b   :  { %v110_v19 = vmul.f32 %v1935_v5, %v79_v18 }
 0x85c   :  { %1613 = vmatpush3.bf16.msra.mxu0 %v1974_v29 }
 0x85d   :  { %1638 = vmatprep.subr.bf16.mxu0 %v1853_v0  ;;  %v124_v21 = vadd.f32 %v1941_v8, %v110_v19 }
 0x921   :  { %v576_v20 = vpop.f32.mrb[8].mxu1 }
 0x922   :  { %v577_v22 = vadd.f32 %v2007_v41, %v576_v20  ;;  %v1596_v23 = vpop.f32.mrb[9].mxu1  ;;  %v647_v24 = vpop.f32.mrb[12].mxu0 }
 0x923   :  { %v653_v27 = vadd.f32 %v647_v24, %v124_v21  ;;  %v579_v30 = vpop.f32.mrb[10].mxu1  ;;  %v1604_v31 = vpop.f32.mrb[13].mxu0 }
 0x924   :  { %1760 = vtanh.f32 %v577_v22  ;;  %v1597_v32 = vpop.f32.mrb[11].mxu1  ;;  %v650_v33 = vpop.f32.mrb[14].mxu0  ;;  %v1446_v37 = vmul.f32 -1.442695, %v577_v22 }
 0x925   :  { %1762 = vtanh.f32 %v653_v27  ;;  %v1605_v34 = vpop.f32.mrb[15].mxu0  ;;  %v1448_v38 = vmul.f32 -1.442695, %v653_v27 }
 0x926   :  { %1764 = vpow2.f32 %v1446_v37 }
 0x927   :  { %1766 = vpow2.f32 %v1448_v38 }
 0x92e   :  { %v1761_v35 = vpop.eup %1760 }
 0x92f   :  { %v1763_v36 = vpop.eup %1762  ;;  %591 = vrot.lane.b32.xlu1 %v1761_v35, %s1856_s14 }
 0x930   :  { %663 = vrot.lane.b32.xlu0 %v1763_v36, %s1856_s14  ;;  %v1765_v39 = vpop.eup %1764 }
 0x931   :  { %v1767_v40 = vpop.eup %1766  ;;  %v585_v42 = vadd.f32 1.0, %v1765_v39 }
 0x932   :  { %v657_v43 = vadd.f32 1.0, %v1767_v40 }
 0x933   :  { %1768 = vrcp.f32 %v585_v42 }
 0x934   :  { %1770 = vrcp.f32 %v657_v43 }
 0x93d   :  { %v1769_v44 = vpop.eup %1768 }
 0x93e   :  { %v1771_v46 = vpop.eup %1770  ;;  %v589_v50 = vmul.f32 %v1769_v44, %v2057_v62  ;;  %v57_v62 = vld [vmem:[%s2298_s0 + $0x8] sm:$0x3] }
 0x93f   :  { %v661_v52 = vmul.f32 %v1771_v46, %v2059_v63 }
 0x9a1   :  { %v592_v45 = vpop.permute.xlu1 %591 }
 0x9a2   :  { %v594_v47 = vmul.f32 %v1769_v44, %v592_v45  ;;  %v664_v48 = vpop.permute.xlu0 %663 }
 0x9a3   :  { %v666_v49 = vmul.f32 %v1771_v46, %v664_v48 }
 0x9a4   :  { %596 = vrot.lane.b32.xlu1 %v594_v47, %s1857_s15 }
 0x9a5   :  { %668 = vrot.lane.b32.xlu0 %v666_v49, %s1857_s15 }
 0xa16   :  { %v597_v51 = vpop.permute.xlu1 %596 }
 0xa17   :  { %v2099_v53 = vadd.f32 %v597_v51, %v589_v50  ;;  %v669_v54 = vpop.permute.xlu0 %668 }
 0xa18   :  { %v2101_v55 = vadd.f32 %v669_v54, %v661_v52  ;;  %v58_v54 = vld [vmem:[%s2298_s0 + $0xa] sm:$0x3] }
 0xa19   :  { %1772 = vtanh.f32 %v2099_v53 }
 0xa1a   :  { %1774 = vtanh.f32 %v2101_v55 }
 0xa23   :  { %v1773_v56 = vpop.eup %1772 }
 0xa24   :  { %v1775_v57 = vpop.eup %1774  ;;  %602 = vrot.lane.b32.xlu1 %v1773_v56, %s1856_s14 }
 0xa25   :  { %674 = vrot.lane.b32.xlu0 %v1775_v57, %s1856_s14 }
 0xa96   :  { %v603_v58 = vpop.permute.xlu1 %602 }
 0xa97   :  { %v605_v59 = vmul.f32 %v1769_v44, %v603_v58  ;;  %v675_v60 = vpop.permute.xlu0 %674 }
 0xa98   :  { %v677_v61 = vmul.f32 %v1771_v46, %v675_v60 }
 0xa99   :  { %683 = vrot.lane.b32.xlu0 %v605_v59, %s1856_s14 }
 0xa9a   :  { %679 = vrot.lane.b32.xlu1 %v677_v61, %s1857_s15  ;;  %v755_v63 = vpack.c.bf16 %v677_v61, %v677_v61 }
 0xa9d   :  { %83 = vperm.xlu0 %1711, %v57_v62  }
 0xa9e   :  { %757 = vrot.lane.b32.xlu1 %v755_v63, %s1857_s15 }
 0xb0b   :  { %v684_v2 = vpop.permute.xlu0 %683 }
 0xb0c   :  { %v680_v4 = vpop.permute.xlu1 %679 }
 0xb0d   :  { %v686_v6 = vsel %vm141_vm1, %v680_v4, %v684_v2 }
 0xb0e   :  { %v687_v7 = vpack.c.bf16 %v686_v6, %v686_v6 }
 0xb10   :  { %1615 = vmatmul.mubr.msk.bf16.vlgmr.msra.gmra.mrb[16].mxu0 %vm240_vm2, %v687_v7  ;;  %v758_v9 = vpop.permute.xlu1 %757 }
 0xb11   :  { %1623 = vmatmul.mubr.msk.bf16.vlgmr.msra.gmra.mrb[12].mxu1 %vm141_vm1, %v758_v9  ;;  %1639 = vmatpush3.bf16.msra.mxu0 %v1907_v1 }
 0xb12   :  { %1627 = vmatpush3.bf16.msra.mxu1 %v1952_v25  ;;  %1640 = vmatprep.subr.bf16.mxu0 %v1853_v0 }
 0xb13   :  { %1628 = vmatprep.subr.bf16.mxu1 %v1853_v0  ;;  %1634 = vmatprep.mubr.msk.bf16.mxu1 %vm1854_vm0, %v1853_v0 }
 0xb14   :  { %1642 = vmatprep.mubr.msk.bf16.mxu0 %vm1854_vm0, %v1853_v0 }
 0xb15   :  { %1641 = vmatpush3.bf16.msra.mxu0 %v1916_v3 }
 0xb16   :  { %1629 = vmatpush3.bf16.msra.mxu1 %v1958_v26  ;;  %1646 = vmatprep.subr.bf16.mxu0 %v1853_v0 }
 0xb17   :  { %1630 = vmatprep.subr.bf16.mxu1 %v1853_v0 }
 0xb1a   :  { %1631 = vmatpush3.bf16.msra.mxu1 %v1966_v28 }
 0xb1b   :  { %1632 = vmatprep.subr.bf16.mxu1 %v1853_v0 }
 0xb1c   :  { %v84_v10 = vpop.permute.xlu0 %83 }
 0xb1d   :  { %v111_v11 = vmul.f32 %v1935_v5, %v84_v10 }
 0xb1e   :  { %1633 = vmatpush3.bf16.msra.mxu1 %v1974_v29 }
 0xb1f   :  { %1658 = vmatprep.subr.bf16.mxu1 %v1853_v0  ;;  %v125_v13 = vadd.f32 %v1941_v8, %v111_v11 }
 0xbe3   :  { %v725_v12 = vpop.f32.mrb[16].mxu0 }
 0xbe4   :  { %v726_v14 = vadd.f32 %v2007_v41, %v725_v12  ;;  %v1616_v15 = vpop.f32.mrb[17].mxu0  ;;  %v796_v16 = vpop.f32.mrb[12].mxu1 }
 0xbe5   :  { %v802_v17 = vadd.f32 %v796_v16, %v125_v13  ;;  %v728_v18 = vpop.f32.mrb[18].mxu0  ;;  %v1624_v19 = vpop.f32.mrb[13].mxu1 }
 0xbe6   :  { %1776 = vtanh.f32 %v726_v14  ;;  %v1617_v20 = vpop.f32.mrb[19].mxu0  ;;  %v799_v21 = vpop.f32.mrb[14].mxu1  ;;  %v1450_v27 = vmul.f32 -1.442695, %v726_v14 }
 0xbe7   :  { %1778 = vtanh.f32 %v802_v17  ;;  %v1625_v22 = vpop.f32.mrb[15].mxu1  ;;  %v1452_v30 = vmul.f32 -1.442695, %v802_v17 }
 0xbe8   :  { %1780 = vpow2.f32 %v1450_v27 }
 0xbe9   :  { %1782 = vpow2.f32 %v1452_v30 }
 0xbf0   :  { %v1777_v23 = vpop.eup %1776 }
 0xbf1   :  { %v1779_v24 = vpop.eup %1778  ;;  %740 = vrot.lane.b32.xlu1 %v1777_v23, %s1856_s14 }
 0xbf2   :  { %812 = vrot.lane.b32.xlu0 %v1779_v24, %s1856_s14  ;;  %v1781_v31 = vpop.eup %1780 }
 0xbf3   :  { %v1783_v32 = vpop.eup %1782  ;;  %v734_v33 = vadd.f32 1.0, %v1781_v31 }
 0xbf4   :  { %v806_v34 = vadd.f32 1.0, %v1783_v32 }
 0xbf5   :  { %1784 = vrcp.f32 %v734_v33 }
 0xbf6   :  { %1786 = vrcp.f32 %v806_v34 }
 0xbff   :  { %v1785_v35 = vpop.eup %1784 }
 0xc00   :  { %v1787_v37 = vpop.eup %1786  ;;  %v738_v42 = vmul.f32 %v1785_v35, %v2099_v53 }
 0xc01   :  { %v810_v44 = vmul.f32 %v1787_v37, %v2101_v55 }
 0xc63   :  { %v741_v36 = vpop.permute.xlu1 %740 }
 0xc64   :  { %v743_v38 = vmul.f32 %v1785_v35, %v741_v36  ;;  %v813_v39 = vpop.permute.xlu0 %812 }
 0xc65   :  { %v815_v40 = vmul.f32 %v1787_v37, %v813_v39 }
 0xc66   :  { %745 = vrot.lane.b32.xlu1 %v743_v38, %s1857_s15 }
 0xc67   :  { %817 = vrot.lane.b32.xlu0 %v815_v40, %s1857_s15 }
 0xcd8   :  { %v746_v43 = vpop.permute.xlu1 %745 }
 0xcd9   :  { %v2141_v45 = vadd.f32 %v746_v43, %v738_v42  ;;  %v818_v46 = vpop.permute.xlu0 %817 }
 0xcda   :  { %v2143_v47 = vadd.f32 %v818_v46, %v810_v44  ;;  %v59_v46 = vld [vmem:[%s2298_s0 + $0xc] sm:$0x3] }
 0xcdb   :  { %1788 = vtanh.f32 %v2141_v45 }
 0xcdc   :  { %1790 = vtanh.f32 %v2143_v47 }
 0xce5   :  { %v1789_v48 = vpop.eup %1788 }
 0xce6   :  { %v1791_v49 = vpop.eup %1790  ;;  %751 = vrot.lane.b32.xlu1 %v1789_v48, %s1856_s14 }
 0xce7   :  { %823 = vrot.lane.b32.xlu0 %v1791_v49, %s1856_s14 }
 0xd58   :  { %v752_v50 = vpop.permute.xlu1 %751 }
 0xd59   :  { %v754_v51 = vmul.f32 %v1785_v35, %v752_v50  ;;  %v824_v52 = vpop.permute.xlu0 %823 }
 0xd5a   :  { %v826_v53 = vmul.f32 %v1787_v37, %v824_v52 }
 0xd5b   :  { %832 = vrot.lane.b32.xlu0 %v754_v51, %s1856_s14 }
 0xd5c   :  { %828 = vrot.lane.b32.xlu1 %v826_v53, %s1857_s15  ;;  %v904_v55 = vpack.c.bf16 %v826_v53, %v826_v53 }
 0xd5f   :  { %88 = vperm.xlu0 %1711, %v58_v54  }
 0xd60   :  { %906 = vrot.lane.b32.xlu1 %v904_v55, %s1857_s15 }
 0xdcd   :  { %v833_v56 = vpop.permute.xlu0 %832 }
 0xdce   :  { %v829_v57 = vpop.permute.xlu1 %828 }
 0xdcf   :  { %v835_v58 = vsel %vm141_vm1, %v829_v57, %v833_v56 }
 0xdd0   :  { %v836_v59 = vpack.c.bf16 %v835_v58, %v835_v58 }
 0xdd2   :  { %1635 = vmatmul.mubr.msk.bf16.vlgmr.msra.gmra.mrb[16].mxu1 %vm240_vm2, %v836_v59  ;;  %v907_v60 = vpop.permute.xlu1 %906 }
 0xdd3   :  { %1643 = vmatmul.mubr.msk.bf16.vlgmr.msra.gmra.mrb[20].mxu0 %vm141_vm1, %v907_v60  ;;  %1659 = vmatpush3.bf16.msra.mxu1 %v1907_v1 }
 0xdd4   :  { %1647 = vmatpush3.bf16.msra.mxu0 %v1952_v25  ;;  %1660 = vmatprep.subr.bf16.mxu1 %v1853_v0 }
 0xdd5   :  { %1648 = vmatprep.subr.bf16.mxu0 %v1853_v0  ;;  %1654 = vmatprep.mubr.msk.bf16.mxu0 %vm1854_vm0, %v1853_v0 }
 0xdd6   :  { %1662 = vmatprep.mubr.msk.bf16.mxu1 %vm1854_vm0, %v1853_v0 }
 0xdd7   :  { %1661 = vmatpush3.bf16.msra.mxu1 %v1916_v3 }
 0xdd8   :  { %1649 = vmatpush3.bf16.msra.mxu0 %v1958_v26  ;;  %1666 = vmatprep.subr.bf16.mxu1 %v1853_v0 }
 0xdd9   :  { %1650 = vmatprep.subr.bf16.mxu0 %v1853_v0 }
 0xddc   :  { %1651 = vmatpush3.bf16.msra.mxu0 %v1966_v28 }
 0xddd   :  { %1652 = vmatprep.subr.bf16.mxu0 %v1853_v0 }
 0xdde   :  { %v89_v61 = vpop.permute.xlu0 %88 }
 0xddf   :  { %v112_v62 = vmul.f32 %v1935_v5, %v89_v61 }
 0xde0   :  { %1653 = vmatpush3.bf16.msra.mxu0 %v1974_v29 }
 0xde1   :  { %1678 = vmatprep.subr.bf16.mxu0 %v1853_v0  ;;  %v126_v2 = vadd.f32 %v1941_v8, %v112_v62 }
 0xea5   :  { %v874_v63 = vpop.f32.mrb[16].mxu1 }
 0xea6   :  { %v875_v4 = vadd.f32 %v2007_v41, %v874_v63  ;;  %v1636_v6 = vpop.f32.mrb[17].mxu1  ;;  %v945_v7 = vpop.f32.mrb[20].mxu0 }
 0xea7   :  { %v951_v9 = vadd.f32 %v945_v7, %v126_v2  ;;  %v877_v10 = vpop.f32.mrb[18].mxu1  ;;  %v1644_v11 = vpop.f32.mrb[21].mxu0 }
 0xea8   :  { %1792 = vtanh.f32 %v875_v4  ;;  %v1637_v12 = vpop.f32.mrb[19].mxu1  ;;  %v948_v13 = vpop.f32.mrb[22].mxu0  ;;  %v1454_v17 = vmul.f32 -1.442695, %v875_v4 }
 0xea9   :  { %1794 = vtanh.f32 %v951_v9  ;;  %v1645_v14 = vpop.f32.mrb[23].mxu0  ;;  %v1456_v18 = vmul.f32 -1.442695, %v951_v9 }
 0xeaa   :  { %1796 = vpow2.f32 %v1454_v17 }
 0xeab   :  { %1798 = vpow2.f32 %v1456_v18 }
 0xeb2   :  { %v1793_v15 = vpop.eup %1792 }
 0xeb3   :  { %v1795_v16 = vpop.eup %1794  ;;  %889 = vrot.lane.b32.xlu1 %v1793_v15, %s1856_s14 }
 0xeb4   :  { %961 = vrot.lane.b32.xlu0 %v1795_v16, %s1856_s14  ;;  %v1797_v19 = vpop.eup %1796 }
 0xeb5   :  { %v1799_v20 = vpop.eup %1798  ;;  %v883_v21 = vadd.f32 1.0, %v1797_v19 }
 0xeb6   :  { %v955_v22 = vadd.f32 1.0, %v1799_v20 }
 0xeb7   :  { %1800 = vrcp.f32 %v883_v21 }
 0xeb8   :  { %1802 = vrcp.f32 %v955_v22 }
 0xec1   :  { %v1801_v23 = vpop.eup %1800 }
 0xec2   :  { %v1803_v27 = vpop.eup %1802  ;;  %v887_v33 = vmul.f32 %v1801_v23, %v2141_v45 }
 0xec3   :  { %v959_v35 = vmul.f32 %v1803_v27, %v2143_v47 }
 0xf25   :  { %v890_v24 = vpop.permute.xlu1 %889 }
 0xf26   :  { %v892_v30 = vmul.f32 %v1801_v23, %v890_v24  ;;  %v962_v31 = vpop.permute.xlu0 %961 }
 0xf27   :  { %v964_v32 = vmul.f32 %v1803_v27, %v962_v31  ;;  %v60_v31 = vld [vmem:[%s2298_s0 + $0xe] sm:$0x3] }
 0xf28   :  { %894 = vrot.lane.b32.xlu1 %v892_v30, %s1857_s15 }
 0xf29   :  { %966 = vrot.lane.b32.xlu0 %v964_v32, %s1857_s15 }
 0xf9a   :  { %v895_v34 = vpop.permute.xlu1 %894 }
 0xf9b   :  { %v2183_v36 = vadd.f32 %v895_v34, %v887_v33  ;;  %v967_v37 = vpop.permute.xlu0 %966 }
 0xf9c   :  { %v2185_v38 = vadd.f32 %v967_v37, %v959_v35 }
 0xf9d   :  { %1804 = vtanh.f32 %v2183_v36 }
 0xf9e   :  { %1806 = vtanh.f32 %v2185_v38 }
 0xfa7   :  { %v1805_v39 = vpop.eup %1804 }
 0xfa8   :  { %v1807_v40 = vpop.eup %1806  ;;  %900 = vrot.lane.b32.xlu1 %v1805_v39, %s1856_s14  ;;  %v1849_v39 = vld [vmem:[%s2301_s4 + $0x8] sm:$0xff]  }
 0xfa9   :  { %972 = vrot.lane.b32.xlu0 %v1807_v40, %s1856_s14 }
0x101a   :  { %v901_v42 = vpop.permute.xlu1 %900 }
0x101b   :  { %v903_v43 = vmul.f32 %v1801_v23, %v901_v42  ;;  %v973_v44 = vpop.permute.xlu0 %972  ;;  %v1850_v42 = vld [vmem:[%s2299_s1] ss:$0 sm:$0xff] }
0x101c   :  { %v975_v45 = vmul.f32 %v1803_v27, %v973_v44 }
0x101d   :  { %981 = vrot.lane.b32.xlu0 %v903_v43, %s1856_s14 }
0x101e   :  { %977 = vrot.lane.b32.xlu1 %v975_v45, %s1857_s15  ;;  %v1053_v47 = vpack.c.bf16 %v975_v45, %v975_v45  ;;  %v1851_v45 = vld [vmem:[%s2300_s2] ss:$0 sm:$0xff] }
0x1021   :  { %93 = vperm.xlu0 %1711, %v59_v46  }
0x1022   :  { %1055 = vrot.lane.b32.xlu1 %v1053_v47, %s1857_s15 }
0x108f   :  { %v982_v48 = vpop.permute.xlu0 %981 }
0x1090   :  { %v978_v49 = vpop.permute.xlu1 %977 }
0x1091   :  { %v984_v50 = vsel %vm141_vm1, %v978_v49, %v982_v48 }
0x1092   :  { %v985_v51 = vpack.c.bf16 %v984_v50, %v984_v50 }
0x1094   :  { %1655 = vmatmul.mubr.msk.bf16.vlgmr.msra.gmra.mrb[24].mxu0 %vm240_vm2, %v985_v51  ;;  %v1056_v52 = vpop.permute.xlu1 %1055 }
0x1095   :  { %1663 = vmatmul.mubr.msk.bf16.vlgmr.msra.gmra.mrb[20].mxu1 %vm141_vm1, %v1056_v52  ;;  %1679 = vmatpush3.bf16.msra.mxu0 %v1907_v1 }
0x1096   :  { %1667 = vmatpush3.bf16.msra.mxu1 %v1952_v25  ;;  %1680 = vmatprep.subr.bf16.mxu0 %v1853_v0 }
0x1097   :  { %1668 = vmatprep.subr.bf16.mxu1 %v1853_v0  ;;  %1674 = vmatprep.mubr.msk.bf16.mxu1 %vm1854_vm0, %v1853_v0 }
0x1098   :  { %1682 = vmatprep.mubr.msk.bf16.mxu0 %vm1854_vm0, %v1853_v0 }
0x1099   :  { %1681 = vmatpush3.bf16.msra.mxu0 %v1916_v3 }
0x109a   :  { %1669 = vmatpush3.bf16.msra.mxu1 %v1958_v26  ;;  %1686 = vmatprep.subr.bf16.mxu0 %v1853_v0 }
0x109b   :  { %1670 = vmatprep.subr.bf16.mxu1 %v1853_v0 }
0x109e   :  { %1671 = vmatpush3.bf16.msra.mxu1 %v1966_v28 }
0x109f   :  { %1672 = vmatprep.subr.bf16.mxu1 %v1853_v0 }
0x10a0   :  { %v94_v1 = vpop.permute.xlu0 %93 }
0x10a1   :  { %v113_v25 = vmul.f32 %v1935_v5, %v94_v1 }
0x10a2   :  { %1673 = vmatpush3.bf16.msra.mxu1 %v1974_v29 }
0x10a3   :  { %1698 = vmatprep.subr.bf16.mxu1 %v1853_v0  ;;  %v127_v3 = vadd.f32 %v1941_v8, %v113_v25 }
0x1167   :  { %v1023_v53 = vpop.f32.mrb[24].mxu0 }
0x1168   :  { %v1024_v26 = vadd.f32 %v2007_v41, %v1023_v53  ;;  %v1656_v54 = vpop.f32.mrb[25].mxu0  ;;  %v1094_v55 = vpop.f32.mrb[20].mxu1 }
0x1169   :  { %v1100_v56 = vadd.f32 %v1094_v55, %v127_v3  ;;  %v1026_v57 = vpop.f32.mrb[26].mxu0  ;;  %v1664_v58 = vpop.f32.mrb[21].mxu1 }
0x116a   :  { %1808 = vtanh.f32 %v1024_v26  ;;  %v1657_v59 = vpop.f32.mrb[27].mxu0  ;;  %v1097_v60 = vpop.f32.mrb[22].mxu1  ;;  %v1458_v5 = vmul.f32 -1.442695, %v1024_v26 }
0x116b   :  { %1810 = vtanh.f32 %v1100_v56  ;;  %v1665_v61 = vpop.f32.mrb[23].mxu1  ;;  %v1460_v8 = vmul.f32 -1.442695, %v1100_v56 }
0x116c   :  { %1812 = vpow2.f32 %v1458_v5 }
0x116d   :  { %1814 = vpow2.f32 %v1460_v8 }
0x1174   :  { %v1809_v62 = vpop.eup %1808 }
0x1175   :  { %v1811_v63 = vpop.eup %1810  ;;  %1038 = vrot.lane.b32.xlu1 %v1809_v62, %s1856_s14 }
0x1176   :  { %1110 = vrot.lane.b32.xlu0 %v1811_v63, %s1856_s14  ;;  %v1813_v2 = vpop.eup %1812 }
0x1177   :  { %v1815_v4 = vpop.eup %1814  ;;  %v1032_v6 = vadd.f32 1.0, %v1813_v2 }
0x1178   :  { %v1104_v7 = vadd.f32 1.0, %v1815_v4 }
0x1179   :  { %1816 = vrcp.f32 %v1032_v6 }
0x117a   :  { %1818 = vrcp.f32 %v1104_v7 }
0x1183   :  { %v1817_v9 = vpop.eup %1816 }
0x1184   :  { %v1819_v11 = vpop.eup %1818  ;;  %v1036_v15 = vmul.f32 %v1817_v9, %v2183_v36 }
0x1185   :  { %v1108_v17 = vmul.f32 %v1819_v11, %v2185_v38  ;;  %v1848_v38 = vld [vmem:[%s2301_s4] sm:$0xff]  }
0x11e7   :  { %v1039_v10 = vpop.permute.xlu1 %1038 }
0x11e8   :  { %v1041_v12 = vmul.f32 %v1817_v9, %v1039_v10  ;;  %v1111_v13 = vpop.permute.xlu0 %1110 }
0x11e9   :  { %v1113_v14 = vmul.f32 %v1819_v11, %v1111_v13 }
0x11ea   :  { %1043 = vrot.lane.b32.xlu1 %v1041_v12, %s1857_s15 }
0x11eb   :  { %1115 = vrot.lane.b32.xlu0 %v1113_v14, %s1857_s15 }
0x125c   :  { %v1044_v16 = vpop.permute.xlu1 %1043 }
0x125d   :  { %v2225_v18 = vadd.f32 %v1044_v16, %v1036_v15  ;;  %v1116_v19 = vpop.permute.xlu0 %1115 }
0x125e   :  { %v2227_v20 = vadd.f32 %v1116_v19, %v1108_v17  ;;  %v1852_v19 = vld [vmem:[%s2302_s5] ss:$0 sm:$0xff] }
0x125f   :  { %1820 = vtanh.f32 %v2225_v18 }
0x1260   :  { %1822 = vtanh.f32 %v2227_v20 }
0x1269   :  { %v1821_v21 = vpop.eup %1820 }
0x126a   :  { %v1823_v22 = vpop.eup %1822  ;;  %1049 = vrot.lane.b32.xlu1 %v1821_v21, %s1856_s14 }
0x126b   :  { %1121 = vrot.lane.b32.xlu0 %v1823_v22, %s1856_s14 }
0x12dc   :  { %v1050_v23 = vpop.permute.xlu1 %1049 }
0x12dd   :  { %v1052_v24 = vmul.f32 %v1817_v9, %v1050_v23  ;;  %v1122_v27 = vpop.permute.xlu0 %1121 }
0x12de   :  { %v1124_v30 = vmul.f32 %v1819_v11, %v1122_v27 }
0x12df   :  { %1130 = vrot.lane.b32.xlu0 %v1052_v24, %s1856_s14 }
0x12e0   :  { %1126 = vrot.lane.b32.xlu1 %v1124_v30, %s1857_s15  ;;  %v1202_v32 = vpack.c.bf16 %v1124_v30, %v1124_v30 }
0x12e3   :  { %98 = vperm.xlu0 %1711, %v60_v31  }
0x12e4   :  { %1204 = vrot.lane.b32.xlu1 %v1202_v32, %s1857_s15 }
0x1351   :  { %v1131_v33 = vpop.permute.xlu0 %1130 }
0x1352   :  { %v1127_v34 = vpop.permute.xlu1 %1126 }
0x1353   :  { %v1133_v35 = vsel %vm141_vm1, %v1127_v34, %v1131_v33 }
0x1354   :  { %v1134_v36 = vpack.c.bf16 %v1133_v35, %v1133_v35 }
0x1356   :  { %1675 = vmatmul.mubr.msk.bf16.vlgmr.msra.gmra.mrb[24].mxu1 %vm240_vm2, %v1134_v36  ;;  %v1205_v37 = vpop.permute.xlu1 %1204 }
0x1357   :  { %1683 = vmatmul.mubr.msk.bf16.vlgmr.msra.gmra.mrb[28].mxu0 %vm141_vm1, %v1205_v37  ;;  %1702 = vmatprep.mubr.msk.bf16.mxu1 %vm1854_vm0, %v1853_v0 }
0x1358   :  { %1687 = vmatpush3.bf16.msra.mxu0 %v1848_v38  ;;  %1694 = vmatprep.mubr.msk.bf16.mxu0 %vm1854_vm0, %v1853_v0  ;;  %v1718_v38 = vld [vmem:[%s2303_s6] sm:$0xff]  }
0x1359   :  { %1688 = vmatprep.subr.bf16.mxu0 %v1853_v0  ;;  %1699 = vmatpush3.bf16.msra.mxu1 %v1718_v38 }
0x135a   :  { %1700 = vmatprep.subr.bf16.mxu1 %v1853_v0 }
0x135c   :  { %1689 = vmatpush3.bf16.msra.mxu0 %v1849_v39  ;;  %v1719_v39 = vld [vmem:[%s2303_s6 + $0x8] sm:$0xff]  }
0x135d   :  { %1690 = vmatprep.subr.bf16.mxu0 %v1853_v0  ;;  %1701 = vmatpush3.bf16.msra.mxu1 %v1719_v39 }
0x1360   :  { %1691 = vmatpush3.bf16.msra.mxu0 %v1966_v28 }
0x1361   :  { %1692 = vmatprep.subr.bf16.mxu0 %v1853_v0 }
0x1362   :  { %v99_v40 = vpop.permute.xlu0 %98 }
0x1363   :  { %v114_v43 = vmul.f32 %v1850_v42, %v99_v40  ;;  %v13_v42 = vstv %s2304_s7 }
0x1364   :  { %1693 = vmatpush3.bf16.msra.mxu0 %v1974_v29  ;;  %14 = vst [vmem:[#allocation2] sm:$0x1] %v13_v42 }
0x1365   :  { %v128_v46 = vadd.f32 %v1851_v45, %v114_v43 }
0x1429   :  { %v1172_v44 = vpop.f32.mrb[24].mxu1 }
0x142a   :  { %v1173_v47 = vadd.f32 %v2007_v41, %v1172_v44  ;;  %v1676_v48 = vpop.f32.mrb[25].mxu1  ;;  %v1243_v28 = vpop.f32.mrb[28].mxu0 }
0x142b   :  { %v1249_v49 = vadd.f32 %v1243_v28, %v128_v46  ;;  %v1175_v50 = vpop.f32.mrb[26].mxu1  ;;  %v1684_v51 = vpop.f32.mrb[29].mxu0 }
0x142c   :  { %1824 = vtanh.f32 %v1173_v47  ;;  %v1677_v29 = vpop.f32.mrb[27].mxu1  ;;  %v1246_v52 = vpop.f32.mrb[30].mxu0  ;;  %v1462_v3 = vmul.f32 -1.442695, %v1173_v47  ;;  %v1467_v47 = vld [vmem:[#allocation2] ss:$0 sm:$0xff] }
0x142d   :  { %1826 = vtanh.f32 %v1249_v49  ;;  %v1685_v1 = vpop.f32.mrb[31].mxu0  ;;  %v1464_v26 = vmul.f32 -1.442695, %v1249_v49 }
0x142e   :  { %1828 = vpow2.f32 %v1462_v3 }
0x142f   :  { %1830 = vpow2.f32 %v1464_v26 }
0x1436   :  { %v1825_v25 = vpop.eup %1824 }
0x1437   :  { %v1827_v53 = vpop.eup %1826  ;;  %1187 = vrot.lane.b32.xlu1 %v1825_v25, %s1856_s14 }
0x1438   :  { %1259 = vrot.lane.b32.xlu0 %v1827_v53, %s1856_s14  ;;  %v1829_v41 = vpop.eup %1828 }
0x1439   :  { %v1831_v54 = vpop.eup %1830  ;;  %v1181_v55 = vadd.f32 1.0, %v1829_v41 }
0x143a   :  { %v1253_v56 = vadd.f32 1.0, %v1831_v54 }
0x143b   :  { %1832 = vrcp.f32 %v1181_v55 }
0x143c   :  { %1834 = vrcp.f32 %v1253_v56 }
0x1445   :  { %v1833_v57 = vpop.eup %1832 }
0x1446   :  { %v1835_v59 = vpop.eup %1834  ;;  %v1185_v63 = vmul.f32 %v1833_v57, %v2225_v18 }
0x1447   :  { %v1257_v8 = vmul.f32 %v1835_v59, %v2227_v20 }
0x14a9   :  { %v1188_v58 = vpop.permute.xlu1 %1187 }
0x14aa   :  { %v1190_v60 = vmul.f32 %v1833_v57, %v1188_v58  ;;  %v1260_v61 = vpop.permute.xlu0 %1259 }
0x14ab   :  { %v1262_v62 = vmul.f32 %v1835_v59, %v1260_v61 }
0x14ac   :  { %1192 = vrot.lane.b32.xlu1 %v1190_v60, %s1857_s15 }
0x14ad   :  { %1264 = vrot.lane.b32.xlu0 %v1262_v62, %s1857_s15 }
0x151e   :  { %v1193_v5 = vpop.permute.xlu1 %1192 }
0x151f   :  { %v1195_v2 = vadd.f32 %v1193_v5, %v1185_v63  ;;  %v1265_v4 = vpop.permute.xlu0 %1264 }
0x1520   :  { %v1267_v6 = vadd.f32 %v1265_v4, %v1257_v8 }
0x1521   :  { %1836 = vtanh.f32 %v1195_v2 }
0x1522   :  { %1838 = vtanh.f32 %v1267_v6 }
0x152b   :  { %v1837_v7 = vpop.eup %1836 }
0x152c   :  { %v1839_v9 = vpop.eup %1838  ;;  %1198 = vrot.lane.b32.xlu1 %v1837_v7, %s1856_s14 }
0x152d   :  { %1270 = vrot.lane.b32.xlu0 %v1839_v9, %s1856_s14 }
0x159e   :  { %v1199_v10 = vpop.permute.xlu1 %1198 }
0x159f   :  { %v1201_v11 = vmul.f32 %v1833_v57, %v1199_v10  ;;  %v1271_v12 = vpop.permute.xlu0 %1270 }
0x15a0   :  { %v1273_v13 = vmul.f32 %v1835_v59, %v1271_v12 }
0x15a1   :  { %1279 = vrot.lane.b32.xlu0 %v1201_v11, %s1856_s14 }
0x15a2   :  { %1275 = vrot.lane.b32.xlu1 %v1273_v13, %s1857_s15 }
0x1613   :  { %v1280_v14 = vpop.permute.xlu0 %1279 }
0x1614   :  { %v1276_v15 = vpop.permute.xlu1 %1275 }
0x1615   :  { %v1282_v16 = vsel %vm141_vm1, %v1276_v15, %v1280_v14 }
0x1616   :  { %v1283_v17 = vpack.c.bf16 %v1282_v16, %v1282_v16 }
0x1618   :  { %1695 = vmatmul.mubr.msk.bf16.vlgmr.msra.gmra.mrb[32].mxu0 %vm240_vm2, %v1283_v17 }
0x16eb   :  { %v1321_v18 = vpop.f32.mrb[32].mxu0 }
0x16ec   :  { %v1322_v20 = vadd.f32 %v1852_v19, %v1321_v18  ;;  %v1696_v21 = vpop.f32.mrb[33].mxu0 }
0x16ed   :  { %v1324_v22 = vpop.f32.mrb[34].mxu0 }
0x16ee   :  { %1840 = vtanh.f32 %v1322_v20  ;;  %v1697_v23 = vpop.f32.mrb[35].mxu0  ;;  %v1466_v27 = vmul.f32 -1.442695, %v1322_v20 }
0x16f0   :  { %1842 = vpow2.f32 %v1466_v27 }
0x16f8   :  { %v1841_v24 = vpop.eup %1840 }
0x16f9   :  { %1336 = vrot.lane.b32.xlu1 %v1841_v24, %s1856_s14 }
0x16fa   :  { %v1843_v30 = vpop.eup %1842 }
0x16fb   :  { %v1330_v31 = vadd.f32 1.0, %v1843_v30 }
0x16fd   :  { %1844 = vrcp.f32 %v1330_v31 }
0x1707   :  { %v1845_v32 = vpop.eup %1844 }
0x1708   :  { %v1334_v35 = vmul.f32 %v1845_v32, %v1195_v2 }
0x176b   :  { %v1337_v33 = vpop.permute.xlu1 %1336 }
0x176c   :  { %v1339_v34 = vmul.f32 %v1845_v32, %v1337_v33 }
0x176e   :  { %1341 = vrot.lane.b32.xlu0 %v1339_v34, %s1857_s15 }
0x17e0   :  { %v1342_v36 = vpop.permute.xlu0 %1341 }
0x17e1   :  { %v1344_v37 = vadd.f32 %v1342_v36, %v1334_v35 }
0x17e3   :  { %1846 = vtanh.f32 %v1344_v37 }
0x17ed   :  { %v1847_v40 = vpop.eup %1846 }
0x17ee   :  { %1347 = vrot.lane.b32.xlu1 %v1847_v40, %s1856_s14 }
0x1860   :  { %v1348_v43 = vpop.permute.xlu1 %1347 }
0x1861   :  { %v1350_v44 = vmul.f32 %v1845_v32, %v1348_v43 }
0x1863   :  { %v1351_v45 = vpack.c.bf16 %v1350_v44, %v1350_v44 }
0x1865   :  { %1364 = vrot.lane.b32.xlu0 %v1351_v45, %s1857_s15 }
0x18d7   :  { %v1365_v46 = vpop.permute.xlu0 %1364 }
0x18d8   :  { %1703 = vmatmul.mubr.msk.bf16.vlgmr.msra.gmra.mrb[28].mxu1 %vm141_vm1, %v1365_v46 }
0x19ab   :  { %v1415_v48 = vpop.f32.mrb[28].mxu1 }
0x19ac   :  { %v1416_v0 = vadd.f32 %v1467_v47, %v1415_v48  ;;  %v1704_v28 = vpop.f32.mrb[29].mxu1 }
0x19ad   :  { %v1418_v49 = vpop.f32.mrb[30].mxu1 }
0x19ae   :  { %1422 = vst.msk [vmem:[%s2305_s8] sm:$0x3] %vm1421_vm3, %v1416_v0  ;;  %v1705_v50 = vpop.f32.mrb[31].mxu1 }

</bundles_post_ra>
